<compile_context>
chip_gen: v7x
topology: tpu7x:2x2x1
jax: 0.10.0
libtpu: 0.0.40
codegen_flags: <defaults>
</compile_context>

<pallas_src>
import functools
import math

import jax
import jax.numpy as jnp
from jax.experimental import pallas as pl
from jax.experimental.pallas import tpu as pltpu

_NEG_SLOPE = 0.01   # F.leaky_relu default
_BN_EPS = 1e-5      # torch.nn.BatchNorm1d default eps


def _leaky(v):
    return jnp.where(v > 0, v, _NEG_SLOPE * v)


def _vmem_limit_bytes(frac=0.85):
    """Per-generation scoped-VMEM limit (~85% of physical, queried at trace time)."""
    try:
        info = pltpu.get_tpu_info()
        cap = getattr(info, "vmem_capacity_bytes", None)
        if cap:
            return int(cap * frac)
    except Exception:
        pass
    return 64 * 1024 * 1024  # conservative fallback


def _gnn_encoder_kernel(x_ref, a_ref, b_ref,
                        c1w1_ref, c1w2_ref, c1v_ref,
                        iwa_ref, iwb_ref, iv_ref,
                        l1w_ref, l1b_ref, l2w_ref, l2b_ref,
                        out_ref, *, num_inner, eps):
    f32 = jnp.float32
    bf16 = jnp.bfloat16

    A = a_ref[...]                 # [N, N] bf16 dense adjacency (dst, src)
    x0 = x_ref[...]                # [N, 1]  f32 (x.unsqueeze(-1))

    def agg(rhs_bf16):             # sum_{j in N(i)} rhs[j]  ==  A @ rhs  (bf16 MXU, f32 acc)
        return jnp.dot(A, rhs_bf16, preferred_element_type=f32)

    # ---- mask = get_mask(x, edge_index, 1) ----
    # TODO(synk): upstream get_mask source unavailable; implemented as the
    # 1-hop receptive-field mask (OR-propagation of the nonzero-node indicator,
    # including self).
    m0 = (jnp.abs(x0) > 0).astype(f32)                                 # [N, 1]

    # ---- conv1: GINConv(Seq(Linear(1,D), ReLU, Linear(D,D), ReLU, BN)) ----
    c1v = c1v_ref[...]                                                 # [6, D]
    b1, b2 = c1v[0:1], c1v[1:2]
    s_m1, t_m1 = c1v[2:3], c1v[3:4]          # MLP BN (folded scale/shift)
    s_o1, t_o1 = c1v[4:5], c1v[5:6]          # bn1 scale (includes 1/sqrt(N)) / shift

    ag0 = agg(jnp.concatenate([x0, m0], axis=1).astype(bf16))          # one A push: [N, 2]
    h = (1.0 + eps[0]) * x0 + ag0[:, 0:1]                              # [N, 1]
    mask = ((m0 + ag0[:, 1:2]) > 0).astype(f32)                        # [N, 1]

    h = jnp.maximum(h * c1w1_ref[...] + b1, 0.0)                       # K=1 matmul == bcast mul
    h = jnp.maximum(jnp.dot(h, c1w2_ref[...], preferred_element_type=f32) + b2, 0.0)
    h = h * s_m1 + t_m1                                                # MLP BN (eval)
    x = _leaky(h)
    x = (x * mask) * s_o1 + t_o1             # mask * GraphSizeNorm * bn1, fused

    D = x.shape[1]

    # ---- residual GIN layers ----
    for i in range(num_inner):
        wa = iwa_ref[i]                      # [D, D]
        wb = iwb_ref[i]                      # [D, D]
        lv = iv_ref[i]                       # [6, D]
        ba, bb = lv[0:1], lv[1:2]
        s_mi, t_mi = lv[2:3], lv[3:4]        # inner MLP BN
        s_oi, t_oi = lv[4:5], lv[5:6]        # outer BN (self.bns[i]), scale includes 1/sqrt(N)

        # Single A push per layer: features + mask column ride together.
        rhs = jnp.concatenate([x.astype(bf16), mask.astype(bf16)], axis=1)     # [N, D+1]
        ag = agg(rhs)
        h = (1.0 + eps[i + 1]) * x + ag[:, :D]
        h = jnp.maximum(jnp.dot(h, wa, preferred_element_type=f32) + ba, 0.0)
        h = jnp.maximum(jnp.dot(h, wb, preferred_element_type=f32) + bb, 0.0)
        h = h * s_mi + t_mi
        x = x + _leaky(h)

        mask = ((mask + ag[:, D:D + 1]) > 0).astype(f32)
        x = (x * mask) * s_oi + t_oi         # mask * GraphSizeNorm * bn, fused

    # ---- output head ----
    x = _leaky(jnp.dot(x, l1w_ref[...], preferred_element_type=f32) + l1b_ref[...])   # [N, H]
    x = x * mask
    x = _leaky(jnp.sum(x * l2w_ref[...], axis=1, keepdims=True) + l2b_ref[...])       # [N, 1]
    x = x * mask

    # ---- per-graph min/max normalization (scatter_max / scatter_min on batch) ----
    # Uses the [N, G] one-hot membership instead of a dense [N, N] same-graph mask.
    sel = b_ref[...] > 0                                                # [N, G]
    gmax = jnp.max(jnp.where(sel, x, -jnp.inf), axis=0, keepdims=True)  # [1, G]
    gmin = jnp.min(jnp.where(sel, x, jnp.inf), axis=0, keepdims=True)   # [1, G]
    node_max = jnp.max(jnp.where(sel, gmax, -jnp.inf), axis=1, keepdims=True)  # [N, 1]
    node_min = jnp.min(jnp.where(sel, gmin, jnp.inf), axis=1, keepdims=True)   # [N, 1]
    out_ref[...] = (x - node_min) / (node_max + 1e-6 - node_min)


def gnn_encoder_forward(x, edge_index, batch, params, num_graphs=None):
    """x: [N] float, edge_index: [2, E] int, batch: [N] int graph ids (contiguous)."""
    N = int(x.shape[0])
    f32 = jnp.float32

    src, dst = edge_index[0], edge_index[1]
    # Dense adjacency in bf16 (small integer multiplicities are exact in bf16).
    A = jnp.zeros((N, N), f32).at[dst, src].add(1.0).astype(jnp.bfloat16)
    # TODO(synk): large-N fallback — when bf16 A exceeds the resident-VMEM budget
    # (esp. v7x's 64 MiB/TC), keep A in HBM (memory_space=pl.ANY) and stream
    # [TM, N] row tiles with double-buffered pltpu.make_async_copy.

    if num_graphs is None:
        num_graphs = int(batch.max()) + 1
    B = (batch[:, None] == jnp.arange(num_graphs, dtype=batch.dtype)[None, :]).astype(f32)

    x_col = x.astype(f32).reshape(N, 1)                   # x.unsqueeze(-1)

    # Fold GraphSizeNorm (batch=None -> x / sqrt(N)) into the outer-BN scales.
    inv_sqrt_n = 1.0 / math.sqrt(N)
    c1vec = params["c1vec"].at[4].multiply(inv_sqrt_n)    # bn1 scale row
    ivec = params["ivec"].at[:, 4].multiply(inv_sqrt_n)   # per-layer outer-BN scale row

    num_inner = int(params["iwa"].shape[0])
    kernel = functools.partial(
        _gnn_encoder_kernel,
        num_inner=num_inner,
        eps=tuple(params["eps"]),
    )
    vmem = pl.BlockSpec(memory_space=pltpu.MemorySpace.VMEM)
    args = (x_col, A, B,
            params["c1w1"], params["c1w2"], c1vec,
            params["iwa"], params["iwb"], ivec,
            params["l1w"], params["l1b"], params["l2w"], params["l2b"])
    return pl.pallas_call(
        kernel,
        out_shape=jax.ShapeDtypeStruct((N, 1), f32),
        in_specs=[vmem] * len(args),
        out_specs=vmem,
        compiler_params=pltpu.CompilerParams(vmem_limit_bytes=_vmem_limit_bytes()),
    )(*args)


def init_params(key, D, H, num_inner):
    """Deterministic synthetic parameters matching GNNEncoder.__init__ shapes.

    BatchNorms (eval mode, default init) are pre-folded to (scale, shift):
    scale = gamma * rsqrt(var + eps), shift = beta - mean * scale.
    """
    keys = iter(jax.random.split(key, 64))

    def lin(fan_in, shape):
        bound = 1.0 / math.sqrt(fan_in)
        return jax.random.uniform(next(keys), shape, jnp.float32, -bound, bound)

    def bn_fold(gamma, beta, mean, var):
        scale = gamma * jax.lax.rsqrt(var + _BN_EPS)
        shift = beta - mean * scale
        return scale, shift

    ones = jnp.ones((1, D), jnp.float32)
    zeros = jnp.zeros((1, D), jnp.float32)
    s_def, t_def = bn_fold(ones, zeros, zeros, ones)      # default-init eval BN
    bn_rows = [s_def, t_def]

    params = {}
    params["c1w1"] = lin(1, (1, D))
    c1b1 = lin(1, (1, D))
    params["c1w2"] = lin(D, (D, D))
    c1b2 = lin(D, (1, D))
    # rows: b1, b2, mlp_bn(scale,shift), bn1(scale,shift)
    params["c1vec"] = jnp.concatenate([c1b1, c1b2] + bn_rows + bn_rows, axis=0)   # [6, D]

    wa, wb, vecs = [], [], []
    for _ in range(num_inner):
        wa.append(lin(D, (D, D)))
        wb.append(lin(D, (D, D)))
        ba = lin(D, (1, D))
        bb = lin(D, (1, D))
        # rows: ba, bb, mlp_bn(scale,shift), outer_bn(scale,shift)
        vecs.append(jnp.concatenate([ba, bb] + bn_rows + bn_rows, axis=0)[None])  # [1, 6, D]
    params["iwa"] = jnp.stack(wa)                 # [L-1, D, D]
    params["iwb"] = jnp.stack(wb)                 # [L-1, D, D]
    params["ivec"] = jnp.concatenate(vecs, axis=0)  # [L-1, 6, D]

    params["l1w"] = lin(D, (D, H))
    params["l1b"] = lin(D, (1, H))
    params["l2w"] = lin(H, (1, H))                # torch Linear(H, 1).weight layout
    params["l2b"] = lin(H, (1, 1))
    # GINConv(train_eps=True) initializes eps to 0.0 (conv1 + num_inner convs)
    params["eps"] = [0.0] * (num_inner + 1)
    return params


if __name__ == "__main__":
    # Small shapes consistent with the module: num_layers=4, hidden_dim_1=16,
    # num_heads=8  ->  D = heads*hidden_dim_1 = 128, head hidden H = 16.
    NUM_LAYERS = 4
    HIDDEN_1 = 16
    HEADS = 8
    D = HEADS * HIDDEN_1       # 128
    H = HIDDEN_1               # 16

    G, N_PER_G = 4, 8
    N = G * N_PER_G            # 32 nodes

    key = jax.random.PRNGKey(0)
    k_params, k_x, k_drop = jax.random.split(key, 3)
    params = init_params(k_params, D, H, NUM_LAYERS - 1)

    # Deterministic graph: directed ring (both directions) inside each graph.
    srcs, dsts = [], []
    for g in range(G):
        base = g * N_PER_G
        for i in range(N_PER_G):
            a = base + i
            b = base + (i + 1) % N_PER_G
            srcs += [a, b]
            dsts += [b, a]
    edge_index = jnp.array([srcs, dsts], dtype=jnp.int32)     # [2, E]
    batch = jnp.repeat(jnp.arange(G, dtype=jnp.int32), N_PER_G)

    # Node features: nonzero on ~half the nodes (makes the receptive-field mask nontrivial).
    x = jax.random.uniform(k_x, (N,), jnp.float32)
    x = jnp.where(jax.random.uniform(k_drop, (N,)) < 0.5, 0.0, x)

    probs = gnn_encoder_forward(x, edge_index, batch, params, num_graphs=G)
    jax.block_until_ready(probs)

    assert probs.shape == (N, 1), probs.shape
    assert bool(jnp.all(jnp.isfinite(probs)))
    assert bool(jnp.all(probs >= -1e-4)) and bool(jnp.all(probs <= 1.0 + 1e-4))
    print("KERNEL_OK")
</pallas_src>

<mosaic_0001>
module attributes {stable_mosaic.version = 11 : i64} {
  func.func @_gnn_encoder_kernel(%arg0: memref<32x1xf32, #tpu.memory_space<vmem>>, %arg1: memref<32x32xbf16, #tpu.memory_space<vmem>>, %arg2: memref<32x4xf32, #tpu.memory_space<vmem>>, %arg3: memref<1x128xf32, #tpu.memory_space<vmem>>, %arg4: memref<128x128xf32, #tpu.memory_space<vmem>>, %arg5: memref<6x128xf32, #tpu.memory_space<vmem>>, %arg6: memref<3x128x128xf32, #tpu.memory_space<vmem>>, %arg7: memref<3x128x128xf32, #tpu.memory_space<vmem>>, %arg8: memref<3x6x128xf32, #tpu.memory_space<vmem>>, %arg9: memref<128x16xf32, #tpu.memory_space<vmem>>, %arg10: memref<1x16xf32, #tpu.memory_space<vmem>>, %arg11: memref<1x16xf32, #tpu.memory_space<vmem>>, %arg12: memref<1x1xf32, #tpu.memory_space<vmem>>, %arg13: memref<32x1xf32, #tpu.memory_space<vmem>>) attributes {dimension_semantics = [], scalar_prefetch = 0 : i64, scratch_operands = 0 : i64, tpu.core_type = #tpu.core_type<tc>} {
    %c0 = arith.constant 0 : index
    %c0_0 = arith.constant 0 : index
    %0 = vector.load %arg1[%c0, %c0_0] : memref<32x32xbf16, #tpu.memory_space<vmem>>, vector<32x32xbf16>
    %c0_1 = arith.constant 0 : index
    %c0_2 = arith.constant 0 : index
    %1 = vector.load %arg0[%c0_1, %c0_2] : memref<32x1xf32, #tpu.memory_space<vmem>>, vector<32x1xf32>
    %2 = math.absf %1 : vector<32x1xf32>
    %cst = arith.constant 0.000000e+00 : f32
    %3 = vector.broadcast %cst : f32 to vector<32x1xf32>
    %4 = arith.cmpf ogt, %2, %3 : vector<32x1xf32>
    %5 = arith.extui %4 : vector<32x1xi1> to vector<32x1xi32>
    %6 = arith.sitofp %5 : vector<32x1xi32> to vector<32x1xf32>
    %c0_3 = arith.constant 0 : index
    %c0_4 = arith.constant 0 : index
    %7 = vector.load %arg5[%c0_3, %c0_4] : memref<6x128xf32, #tpu.memory_space<vmem>>, vector<6x128xf32>
    %8 = vector.extract_strided_slice %7 {offsets = [0, 0], sizes = [1, 128], strides = [1, 1]} : vector<6x128xf32> to vector<1x128xf32>
    %9 = vector.extract_strided_slice %7 {offsets = [1, 0], sizes = [1, 128], strides = [1, 1]} : vector<6x128xf32> to vector<1x128xf32>
    %10 = vector.extract_strided_slice %7 {offsets = [2, 0], sizes = [1, 128], strides = [1, 1]} : vector<6x128xf32> to vector<1x128xf32>
    %11 = vector.extract_strided_slice %7 {offsets = [3, 0], sizes = [1, 128], strides = [1, 1]} : vector<6x128xf32> to vector<1x128xf32>
    %12 = vector.extract_strided_slice %7 {offsets = [4, 0], sizes = [1, 128], strides = [1, 1]} : vector<6x128xf32> to vector<1x128xf32>
    %13 = vector.extract_strided_slice %7 {offsets = [5, 0], sizes = [1, 128], strides = [1, 1]} : vector<6x128xf32> to vector<1x128xf32>
    %14 = tpu.concatenate %1, %6 in 1 : vector<32x1xf32>, vector<32x1xf32> -> vector<32x2xf32>
    %15 = arith.truncf %14 : vector<32x2xf32> to vector<32x2xbf16>
    %cst_5 = arith.constant dense<0.000000e+00> : vector<32x2xf32>
    %16 = tpu.matmul %0, %15, %cst_5 {dimension_numbers = #tpu.dot_dimension_numbers<[1], [0], [0], [1], [0, 0, 1, 1], [], []>} : vector<32x32xbf16>, vector<32x2xbf16>, vector<32x2xf32> -> vector<32x2xf32>
    %cst_6 = arith.constant 1.000000e+00 : f32
    %17 = vector.broadcast %cst_6 : f32 to vector<32x1xf32>
    %18 = arith.mulf %17, %1 : vector<32x1xf32>
    %19 = vector.extract_strided_slice %16 {offsets = [0, 0], sizes = [32, 1], strides = [1, 1]} : vector<32x2xf32> to vector<32x1xf32>
    %20 = arith.addf %18, %19 : vector<32x1xf32>
    %21 = vector.extract_strided_slice %16 {offsets = [0, 1], sizes = [32, 1], strides = [1, 1]} : vector<32x2xf32> to vector<32x1xf32>
    %22 = arith.addf %6, %21 : vector<32x1xf32>
    %cst_7 = arith.constant 0.000000e+00 : f32
    %23 = vector.broadcast %cst_7 : f32 to vector<32x1xf32>
    %24 = arith.cmpf ogt, %22, %23 : vector<32x1xf32>
    %25 = arith.extui %24 : vector<32x1xi1> to vector<32x1xi32>
    %26 = arith.sitofp %25 : vector<32x1xi32> to vector<32x1xf32>
    %c0_8 = arith.constant 0 : index
    %c0_9 = arith.constant 0 : index
    %27 = vector.load %arg3[%c0_8, %c0_9] : memref<1x128xf32, #tpu.memory_space<vmem>>, vector<1x128xf32>
    %28 = vector.broadcast %20 : vector<32x1xf32> to vector<32x128xf32>
    %29 = vector.broadcast %27 : vector<1x128xf32> to vector<32x128xf32>
    %30 = arith.mulf %28, %29 : vector<32x128xf32>
    %31 = vector.broadcast %8 : vector<1x128xf32> to vector<32x128xf32>
    %32 = arith.addf %30, %31 : vector<32x128xf32>
    %cst_10 = arith.constant 0.000000e+00 : f32
    %33 = vector.broadcast %cst_10 : f32 to vector<32x128xf32>
    %34 = arith.maximumf %32, %33 : vector<32x128xf32>
    %c0_11 = arith.constant 0 : index
    %c0_12 = arith.constant 0 : index
    %35 = vector.load %arg4[%c0_11, %c0_12] : memref<128x128xf32, #tpu.memory_space<vmem>>, vector<128x128xf32>
    %cst_13 = arith.constant dense<0.000000e+00> : vector<32x128xf32>
    %36 = tpu.matmul %34, %35, %cst_13 {dimension_numbers = #tpu.dot_dimension_numbers<[1], [0], [0], [1], [0, 0, 1, 1], [], []>} : vector<32x128xf32>, vector<128x128xf32>, vector<32x128xf32> -> vector<32x128xf32>
    %37 = vector.broadcast %9 : vector<1x128xf32> to vector<32x128xf32>
    %38 = arith.addf %36, %37 : vector<32x128xf32>
    %cst_14 = arith.constant 0.000000e+00 : f32
    %39 = vector.broadcast %cst_14 : f32 to vector<32x128xf32>
    %40 = arith.maximumf %38, %39 : vector<32x128xf32>
    %41 = vector.broadcast %10 : vector<1x128xf32> to vector<32x128xf32>
    %42 = arith.mulf %40, %41 : vector<32x128xf32>
    %43 = vector.broadcast %11 : vector<1x128xf32> to vector<32x128xf32>
    %44 = arith.addf %42, %43 : vector<32x128xf32>
    %cst_15 = arith.constant 0.000000e+00 : f32
    %45 = vector.broadcast %cst_15 : f32 to vector<32x128xf32>
    %46 = arith.cmpf ogt, %44, %45 : vector<32x128xf32>
    %cst_16 = arith.constant 0.00999999977 : f32
    %47 = vector.broadcast %cst_16 : f32 to vector<32x128xf32>
    %48 = arith.mulf %47, %44 : vector<32x128xf32>
    %49 = arith.select %46, %44, %48 : vector<32x128xi1>, vector<32x128xf32>
    %50 = vector.broadcast %26 : vector<32x1xf32> to vector<32x128xf32>
    %51 = arith.mulf %49, %50 : vector<32x128xf32>
    %52 = vector.broadcast %12 : vector<1x128xf32> to vector<32x128xf32>
    %53 = arith.mulf %51, %52 : vector<32x128xf32>
    %54 = vector.broadcast %13 : vector<1x128xf32> to vector<32x128xf32>
    %55 = arith.addf %53, %54 : vector<32x128xf32>
    %c0_17 = arith.constant 0 : index
    %c0_18 = arith.constant 0 : index
    %c0_19 = arith.constant 0 : index
    %56 = vector.load %arg6[%c0_17, %c0_18, %c0_19] : memref<3x128x128xf32, #tpu.memory_space<vmem>>, vector<1x128x128xf32>
    %57 = vector.shape_cast %56 : vector<1x128x128xf32> to vector<128x128xf32>
    %c0_20 = arith.constant 0 : index
    %c0_21 = arith.constant 0 : index
    %c0_22 = arith.constant 0 : index
    %58 = vector.load %arg7[%c0_20, %c0_21, %c0_22] : memref<3x128x128xf32, #tpu.memory_space<vmem>>, vector<1x128x128xf32>
    %59 = vector.shape_cast %58 : vector<1x128x128xf32> to vector<128x128xf32>
    %c0_23 = arith.constant 0 : index
    %c0_24 = arith.constant 0 : index
    %c0_25 = arith.constant 0 : index
    %60 = vector.load %arg8[%c0_23, %c0_24, %c0_25] : memref<3x6x128xf32, #tpu.memory_space<vmem>>, vector<1x6x128xf32>
    %61 = vector.shape_cast %60 : vector<1x6x128xf32> to vector<6x128xf32>
    %62 = vector.extract_strided_slice %61 {offsets = [0, 0], sizes = [1, 128], strides = [1, 1]} : vector<6x128xf32> to vector<1x128xf32>
    %63 = vector.extract_strided_slice %61 {offsets = [1, 0], sizes = [1, 128], strides = [1, 1]} : vector<6x128xf32> to vector<1x128xf32>
    %64 = vector.extract_strided_slice %61 {offsets = [2, 0], sizes = [1, 128], strides = [1, 1]} : vector<6x128xf32> to vector<1x128xf32>
    %65 = vector.extract_strided_slice %61 {offsets = [3, 0], sizes = [1, 128], strides = [1, 1]} : vector<6x128xf32> to vector<1x128xf32>
    %66 = vector.extract_strided_slice %61 {offsets = [4, 0], sizes = [1, 128], strides = [1, 1]} : vector<6x128xf32> to vector<1x128xf32>
    %67 = vector.extract_strided_slice %61 {offsets = [5, 0], sizes = [1, 128], strides = [1, 1]} : vector<6x128xf32> to vector<1x128xf32>
    %68 = arith.truncf %55 : vector<32x128xf32> to vector<32x128xbf16>
    %69 = arith.truncf %26 : vector<32x1xf32> to vector<32x1xbf16>
    %70 = tpu.concatenate %68, %69 in 1 : vector<32x128xbf16>, vector<32x1xbf16> -> vector<32x129xbf16>
    %cst_26 = arith.constant dense<0.000000e+00> : vector<32x129xf32>
    %71 = tpu.matmul %0, %70, %cst_26 {dimension_numbers = #tpu.dot_dimension_numbers<[1], [0], [0], [1], [0, 0, 1, 1], [], []>} : vector<32x32xbf16>, vector<32x129xbf16>, vector<32x129xf32> -> vector<32x129xf32>
    %cst_27 = arith.constant 1.000000e+00 : f32
    %72 = vector.broadcast %cst_27 : f32 to vector<32x128xf32>
    %73 = arith.mulf %72, %55 : vector<32x128xf32>
    %74 = vector.extract_strided_slice %71 {offsets = [0, 0], sizes = [32, 128], strides = [1, 1]} : vector<32x129xf32> to vector<32x128xf32>
    %75 = arith.addf %73, %74 : vector<32x128xf32>
    %cst_28 = arith.constant dense<0.000000e+00> : vector<32x128xf32>
    %76 = tpu.matmul %75, %57, %cst_28 {dimension_numbers = #tpu.dot_dimension_numbers<[1], [0], [0], [1], [0, 0, 1, 1], [], []>} : vector<32x128xf32>, vector<128x128xf32>, vector<32x128xf32> -> vector<32x128xf32>
    %77 = vector.broadcast %62 : vector<1x128xf32> to vector<32x128xf32>
    %78 = arith.addf %76, %77 : vector<32x128xf32>
    %cst_29 = arith.constant 0.000000e+00 : f32
    %79 = vector.broadcast %cst_29 : f32 to vector<32x128xf32>
    %80 = arith.maximumf %78, %79 : vector<32x128xf32>
    %cst_30 = arith.constant dense<0.000000e+00> : vector<32x128xf32>
    %81 = tpu.matmul %80, %59, %cst_30 {dimension_numbers = #tpu.dot_dimension_numbers<[1], [0], [0], [1], [0, 0, 1, 1], [], []>} : vector<32x128xf32>, vector<128x128xf32>, vector<32x128xf32> -> vector<32x128xf32>
    %82 = vector.broadcast %63 : vector<1x128xf32> to vector<32x128xf32>
    %83 = arith.addf %81, %82 : vector<32x128xf32>
    %cst_31 = arith.constant 0.000000e+00 : f32
    %84 = vector.broadcast %cst_31 : f32 to vector<32x128xf32>
    %85 = arith.maximumf %83, %84 : vector<32x128xf32>
    %86 = vector.broadcast %64 : vector<1x128xf32> to vector<32x128xf32>
    %87 = arith.mulf %85, %86 : vector<32x128xf32>
    %88 = vector.broadcast %65 : vector<1x128xf32> to vector<32x128xf32>
    %89 = arith.addf %87, %88 : vector<32x128xf32>
    %cst_32 = arith.constant 0.000000e+00 : f32
    %90 = vector.broadcast %cst_32 : f32 to vector<32x128xf32>
    %91 = arith.cmpf ogt, %89, %90 : vector<32x128xf32>
    %cst_33 = arith.constant 0.00999999977 : f32
    %92 = vector.broadcast %cst_33 : f32 to vector<32x128xf32>
    %93 = arith.mulf %92, %89 : vector<32x128xf32>
    %94 = arith.select %91, %89, %93 : vector<32x128xi1>, vector<32x128xf32>
    %95 = arith.addf %55, %94 : vector<32x128xf32>
    %96 = vector.extract_strided_slice %71 {offsets = [0, 128], sizes = [32, 1], strides = [1, 1]} : vector<32x129xf32> to vector<32x1xf32>
    %97 = arith.addf %26, %96 : vector<32x1xf32>
    %cst_34 = arith.constant 0.000000e+00 : f32
    %98 = vector.broadcast %cst_34 : f32 to vector<32x1xf32>
    %99 = arith.cmpf ogt, %97, %98 : vector<32x1xf32>
    %100 = arith.extui %99 : vector<32x1xi1> to vector<32x1xi32>
    %101 = arith.sitofp %100 : vector<32x1xi32> to vector<32x1xf32>
    %102 = vector.broadcast %101 : vector<32x1xf32> to vector<32x128xf32>
    %103 = arith.mulf %95, %102 : vector<32x128xf32>
    %104 = vector.broadcast %66 : vector<1x128xf32> to vector<32x128xf32>
    %105 = arith.mulf %103, %104 : vector<32x128xf32>
    %106 = vector.broadcast %67 : vector<1x128xf32> to vector<32x128xf32>
    %107 = arith.addf %105, %106 : vector<32x128xf32>
    %c1 = arith.constant 1 : index
    %c0_35 = arith.constant 0 : index
    %c0_36 = arith.constant 0 : index
    %108 = vector.load %arg6[%c1, %c0_35, %c0_36] : memref<3x128x128xf32, #tpu.memory_space<vmem>>, vector<1x128x128xf32>
    %109 = vector.shape_cast %108 : vector<1x128x128xf32> to vector<128x128xf32>
    %c1_37 = arith.constant 1 : index
    %c0_38 = arith.constant 0 : index
    %c0_39 = arith.constant 0 : index
    %110 = vector.load %arg7[%c1_37, %c0_38, %c0_39] : memref<3x128x128xf32, #tpu.memory_space<vmem>>, vector<1x128x128xf32>
    %111 = vector.shape_cast %110 : vector<1x128x128xf32> to vector<128x128xf32>
    %c1_40 = arith.constant 1 : index
    %c0_41 = arith.constant 0 : index
    %c0_42 = arith.constant 0 : index
    %112 = vector.load %arg8[%c1_40, %c0_41, %c0_42] : memref<3x6x128xf32, #tpu.memory_space<vmem>>, vector<1x6x128xf32>
    %113 = vector.shape_cast %112 : vector<1x6x128xf32> to vector<6x128xf32>
    %114 = vector.extract_strided_slice %113 {offsets = [0, 0], sizes = [1, 128], strides = [1, 1]} : vector<6x128xf32> to vector<1x128xf32>
    %115 = vector.extract_strided_slice %113 {offsets = [1, 0], sizes = [1, 128], strides = [1, 1]} : vector<6x128xf32> to vector<1x128xf32>
    %116 = vector.extract_strided_slice %113 {offsets = [2, 0], sizes = [1, 128], strides = [1, 1]} : vector<6x128xf32> to vector<1x128xf32>
    %117 = vector.extract_strided_slice %113 {offsets = [3, 0], sizes = [1, 128], strides = [1, 1]} : vector<6x128xf32> to vector<1x128xf32>
    %118 = vector.extract_strided_slice %113 {offsets = [4, 0], sizes = [1, 128], strides = [1, 1]} : vector<6x128xf32> to vector<1x128xf32>
    %119 = vector.extract_strided_slice %113 {offsets = [5, 0], sizes = [1, 128], strides = [1, 1]} : vector<6x128xf32> to vector<1x128xf32>
    %120 = arith.truncf %107 : vector<32x128xf32> to vector<32x128xbf16>
    %121 = arith.truncf %101 : vector<32x1xf32> to vector<32x1xbf16>
    %122 = tpu.concatenate %120, %121 in 1 : vector<32x128xbf16>, vector<32x1xbf16> -> vector<32x129xbf16>
    %cst_43 = arith.constant dense<0.000000e+00> : vector<32x129xf32>
    %123 = tpu.matmul %0, %122, %cst_43 {dimension_numbers = #tpu.dot_dimension_numbers<[1], [0], [0], [1], [0, 0, 1, 1], [], []>} : vector<32x32xbf16>, vector<32x129xbf16>, vector<32x129xf32> -> vector<32x129xf32>
    %cst_44 = arith.constant 1.000000e+00 : f32
    %124 = vector.broadcast %cst_44 : f32 to vector<32x128xf32>
    %125 = arith.mulf %124, %107 : vector<32x128xf32>
    %126 = vector.extract_strided_slice %123 {offsets = [0, 0], sizes = [32, 128], strides = [1, 1]} : vector<32x129xf32> to vector<32x128xf32>
    %127 = arith.addf %125, %126 : vector<32x128xf32>
    %cst_45 = arith.constant dense<0.000000e+00> : vector<32x128xf32>
    %128 = tpu.matmul %127, %109, %cst_45 {dimension_numbers = #tpu.dot_dimension_numbers<[1], [0], [0], [1], [0, 0, 1, 1], [], []>} : vector<32x128xf32>, vector<128x128xf32>, vector<32x128xf32> -> vector<32x128xf32>
    %129 = vector.broadcast %114 : vector<1x128xf32> to vector<32x128xf32>
    %130 = arith.addf %128, %129 : vector<32x128xf32>
    %cst_46 = arith.constant 0.000000e+00 : f32
    %131 = vector.broadcast %cst_46 : f32 to vector<32x128xf32>
    %132 = arith.maximumf %130, %131 : vector<32x128xf32>
    %cst_47 = arith.constant dense<0.000000e+00> : vector<32x128xf32>
    %133 = tpu.matmul %132, %111, %cst_47 {dimension_numbers = #tpu.dot_dimension_numbers<[1], [0], [0], [1], [0, 0, 1, 1], [], []>} : vector<32x128xf32>, vector<128x128xf32>, vector<32x128xf32> -> vector<32x128xf32>
    %134 = vector.broadcast %115 : vector<1x128xf32> to vector<32x128xf32>
    %135 = arith.addf %133, %134 : vector<32x128xf32>
    %cst_48 = arith.constant 0.000000e+00 : f32
    %136 = vector.broadcast %cst_48 : f32 to vector<32x128xf32>
    %137 = arith.maximumf %135, %136 : vector<32x128xf32>
    %138 = vector.broadcast %116 : vector<1x128xf32> to vector<32x128xf32>
    %139 = arith.mulf %137, %138 : vector<32x128xf32>
    %140 = vector.broadcast %117 : vector<1x128xf32> to vector<32x128xf32>
    %141 = arith.addf %139, %140 : vector<32x128xf32>
    %cst_49 = arith.constant 0.000000e+00 : f32
    %142 = vector.broadcast %cst_49 : f32 to vector<32x128xf32>
    %143 = arith.cmpf ogt, %141, %142 : vector<32x128xf32>
    %cst_50 = arith.constant 0.00999999977 : f32
    %144 = vector.broadcast %cst_50 : f32 to vector<32x128xf32>
    %145 = arith.mulf %144, %141 : vector<32x128xf32>
    %146 = arith.select %143, %141, %145 : vector<32x128xi1>, vector<32x128xf32>
    %147 = arith.addf %107, %146 : vector<32x128xf32>
    %148 = vector.extract_strided_slice %123 {offsets = [0, 128], sizes = [32, 1], strides = [1, 1]} : vector<32x129xf32> to vector<32x1xf32>
    %149 = arith.addf %101, %148 : vector<32x1xf32>
    %cst_51 = arith.constant 0.000000e+00 : f32
    %150 = vector.broadcast %cst_51 : f32 to vector<32x1xf32>
    %151 = arith.cmpf ogt, %149, %150 : vector<32x1xf32>
    %152 = arith.extui %151 : vector<32x1xi1> to vector<32x1xi32>
    %153 = arith.sitofp %152 : vector<32x1xi32> to vector<32x1xf32>
    %154 = vector.broadcast %153 : vector<32x1xf32> to vector<32x128xf32>
    %155 = arith.mulf %147, %154 : vector<32x128xf32>
    %156 = vector.broadcast %118 : vector<1x128xf32> to vector<32x128xf32>
    %157 = arith.mulf %155, %156 : vector<32x128xf32>
    %158 = vector.broadcast %119 : vector<1x128xf32> to vector<32x128xf32>
    %159 = arith.addf %157, %158 : vector<32x128xf32>
    %c2 = arith.constant 2 : index
    %c0_52 = arith.constant 0 : index
    %c0_53 = arith.constant 0 : index
    %160 = vector.load %arg6[%c2, %c0_52, %c0_53] : memref<3x128x128xf32, #tpu.memory_space<vmem>>, vector<1x128x128xf32>
    %161 = vector.shape_cast %160 : vector<1x128x128xf32> to vector<128x128xf32>
    %c2_54 = arith.constant 2 : index
    %c0_55 = arith.constant 0 : index
    %c0_56 = arith.constant 0 : index
    %162 = vector.load %arg7[%c2_54, %c0_55, %c0_56] : memref<3x128x128xf32, #tpu.memory_space<vmem>>, vector<1x128x128xf32>
    %163 = vector.shape_cast %162 : vector<1x128x128xf32> to vector<128x128xf32>
    %c2_57 = arith.constant 2 : index
    %c0_58 = arith.constant 0 : index
    %c0_59 = arith.constant 0 : index
    %164 = vector.load %arg8[%c2_57, %c0_58, %c0_59] : memref<3x6x128xf32, #tpu.memory_space<vmem>>, vector<1x6x128xf32>
    %165 = vector.shape_cast %164 : vector<1x6x128xf32> to vector<6x128xf32>
    %166 = vector.extract_strided_slice %165 {offsets = [0, 0], sizes = [1, 128], strides = [1, 1]} : vector<6x128xf32> to vector<1x128xf32>
    %167 = vector.extract_strided_slice %165 {offsets = [1, 0], sizes = [1, 128], strides = [1, 1]} : vector<6x128xf32> to vector<1x128xf32>
    %168 = vector.extract_strided_slice %165 {offsets = [2, 0], sizes = [1, 128], strides = [1, 1]} : vector<6x128xf32> to vector<1x128xf32>
    %169 = vector.extract_strided_slice %165 {offsets = [3, 0], sizes = [1, 128], strides = [1, 1]} : vector<6x128xf32> to vector<1x128xf32>
    %170 = vector.extract_strided_slice %165 {offsets = [4, 0], sizes = [1, 128], strides = [1, 1]} : vector<6x128xf32> to vector<1x128xf32>
    %171 = vector.extract_strided_slice %165 {offsets = [5, 0], sizes = [1, 128], strides = [1, 1]} : vector<6x128xf32> to vector<1x128xf32>
    %172 = arith.truncf %159 : vector<32x128xf32> to vector<32x128xbf16>
    %173 = arith.truncf %153 : vector<32x1xf32> to vector<32x1xbf16>
    %174 = tpu.concatenate %172, %173 in 1 : vector<32x128xbf16>, vector<32x1xbf16> -> vector<32x129xbf16>
    %cst_60 = arith.constant dense<0.000000e+00> : vector<32x129xf32>
    %175 = tpu.matmul %0, %174, %cst_60 {dimension_numbers = #tpu.dot_dimension_numbers<[1], [0], [0], [1], [0, 0, 1, 1], [], []>} : vector<32x32xbf16>, vector<32x129xbf16>, vector<32x129xf32> -> vector<32x129xf32>
    %cst_61 = arith.constant 1.000000e+00 : f32
    %176 = vector.broadcast %cst_61 : f32 to vector<32x128xf32>
    %177 = arith.mulf %176, %159 : vector<32x128xf32>
    %178 = vector.extract_strided_slice %175 {offsets = [0, 0], sizes = [32, 128], strides = [1, 1]} : vector<32x129xf32> to vector<32x128xf32>
    %179 = arith.addf %177, %178 : vector<32x128xf32>
    %cst_62 = arith.constant dense<0.000000e+00> : vector<32x128xf32>
    %180 = tpu.matmul %179, %161, %cst_62 {dimension_numbers = #tpu.dot_dimension_numbers<[1], [0], [0], [1], [0, 0, 1, 1], [], []>} : vector<32x128xf32>, vector<128x128xf32>, vector<32x128xf32> -> vector<32x128xf32>
    %181 = vector.broadcast %166 : vector<1x128xf32> to vector<32x128xf32>
    %182 = arith.addf %180, %181 : vector<32x128xf32>
    %cst_63 = arith.constant 0.000000e+00 : f32
    %183 = vector.broadcast %cst_63 : f32 to vector<32x128xf32>
    %184 = arith.maximumf %182, %183 : vector<32x128xf32>
    %cst_64 = arith.constant dense<0.000000e+00> : vector<32x128xf32>
    %185 = tpu.matmul %184, %163, %cst_64 {dimension_numbers = #tpu.dot_dimension_numbers<[1], [0], [0], [1], [0, 0, 1, 1], [], []>} : vector<32x128xf32>, vector<128x128xf32>, vector<32x128xf32> -> vector<32x128xf32>
    %186 = vector.broadcast %167 : vector<1x128xf32> to vector<32x128xf32>
    %187 = arith.addf %185, %186 : vector<32x128xf32>
    %cst_65 = arith.constant 0.000000e+00 : f32
    %188 = vector.broadcast %cst_65 : f32 to vector<32x128xf32>
    %189 = arith.maximumf %187, %188 : vector<32x128xf32>
    %190 = vector.broadcast %168 : vector<1x128xf32> to vector<32x128xf32>
    %191 = arith.mulf %189, %190 : vector<32x128xf32>
    %192 = vector.broadcast %169 : vector<1x128xf32> to vector<32x128xf32>
    %193 = arith.addf %191, %192 : vector<32x128xf32>
    %cst_66 = arith.constant 0.000000e+00 : f32
    %194 = vector.broadcast %cst_66 : f32 to vector<32x128xf32>
    %195 = arith.cmpf ogt, %193, %194 : vector<32x128xf32>
    %cst_67 = arith.constant 0.00999999977 : f32
    %196 = vector.broadcast %cst_67 : f32 to vector<32x128xf32>
    %197 = arith.mulf %196, %193 : vector<32x128xf32>
    %198 = arith.select %195, %193, %197 : vector<32x128xi1>, vector<32x128xf32>
    %199 = arith.addf %159, %198 : vector<32x128xf32>
    %200 = vector.extract_strided_slice %175 {offsets = [0, 128], sizes = [32, 1], strides = [1, 1]} : vector<32x129xf32> to vector<32x1xf32>
    %201 = arith.addf %153, %200 : vector<32x1xf32>
    %cst_68 = arith.constant 0.000000e+00 : f32
    %202 = vector.broadcast %cst_68 : f32 to vector<32x1xf32>
    %203 = arith.cmpf ogt, %201, %202 : vector<32x1xf32>
    %204 = arith.extui %203 : vector<32x1xi1> to vector<32x1xi32>
    %205 = arith.sitofp %204 : vector<32x1xi32> to vector<32x1xf32>
    %206 = vector.broadcast %205 : vector<32x1xf32> to vector<32x128xf32>
    %207 = arith.mulf %199, %206 : vector<32x128xf32>
    %208 = vector.broadcast %170 : vector<1x128xf32> to vector<32x128xf32>
    %209 = arith.mulf %207, %208 : vector<32x128xf32>
    %210 = vector.broadcast %171 : vector<1x128xf32> to vector<32x128xf32>
    %211 = arith.addf %209, %210 : vector<32x128xf32>
    %c0_69 = arith.constant 0 : index
    %c0_70 = arith.constant 0 : index
    %212 = vector.load %arg9[%c0_69, %c0_70] : memref<128x16xf32, #tpu.memory_space<vmem>>, vector<128x16xf32>
    %cst_71 = arith.constant dense<0.000000e+00> : vector<32x16xf32>
    %213 = tpu.matmul %211, %212, %cst_71 {dimension_numbers = #tpu.dot_dimension_numbers<[1], [0], [0], [1], [0, 0, 1, 1], [], []>} : vector<32x128xf32>, vector<128x16xf32>, vector<32x16xf32> -> vector<32x16xf32>
    %c0_72 = arith.constant 0 : index
    %c0_73 = arith.constant 0 : index
    %214 = vector.load %arg10[%c0_72, %c0_73] : memref<1x16xf32, #tpu.memory_space<vmem>>, vector<1x16xf32>
    %215 = vector.broadcast %214 : vector<1x16xf32> to vector<32x16xf32>
    %216 = arith.addf %213, %215 : vector<32x16xf32>
    %cst_74 = arith.constant 0.000000e+00 : f32
    %217 = vector.broadcast %cst_74 : f32 to vector<32x16xf32>
    %218 = arith.cmpf ogt, %216, %217 : vector<32x16xf32>
    %cst_75 = arith.constant 0.00999999977 : f32
    %219 = vector.broadcast %cst_75 : f32 to vector<32x16xf32>
    %220 = arith.mulf %219, %216 : vector<32x16xf32>
    %221 = arith.select %218, %216, %220 : vector<32x16xi1>, vector<32x16xf32>
    %222 = vector.broadcast %205 : vector<32x1xf32> to vector<32x16xf32>
    %223 = arith.mulf %221, %222 : vector<32x16xf32>
    %c0_76 = arith.constant 0 : index
    %c0_77 = arith.constant 0 : index
    %224 = vector.load %arg11[%c0_76, %c0_77] : memref<1x16xf32, #tpu.memory_space<vmem>>, vector<1x16xf32>
    %225 = vector.broadcast %224 : vector<1x16xf32> to vector<32x16xf32>
    %226 = arith.mulf %223, %225 : vector<32x16xf32>
    %cst_78 = arith.constant dense<0.000000e+00> : vector<32xf32>
    %227 = vector.multi_reduction <add>, %226, %cst_78 [1] : vector<32x16xf32> to vector<32xf32>
    %228 = vector.shape_cast %227 : vector<32xf32> to vector<32x1xf32>
    %c0_79 = arith.constant 0 : index
    %c0_80 = arith.constant 0 : index
    %229 = vector.load %arg12[%c0_79, %c0_80] : memref<1x1xf32, #tpu.memory_space<vmem>>, vector<1x1xf32>
    %230 = vector.broadcast %229 : vector<1x1xf32> to vector<32x1xf32>
    %231 = arith.addf %228, %230 : vector<32x1xf32>
    %cst_81 = arith.constant 0.000000e+00 : f32
    %232 = vector.broadcast %cst_81 : f32 to vector<32x1xf32>
    %233 = arith.cmpf ogt, %231, %232 : vector<32x1xf32>
    %cst_82 = arith.constant 0.00999999977 : f32
    %234 = vector.broadcast %cst_82 : f32 to vector<32x1xf32>
    %235 = arith.mulf %234, %231 : vector<32x1xf32>
    %236 = arith.select %233, %231, %235 : vector<32x1xi1>, vector<32x1xf32>
    %237 = arith.mulf %236, %205 : vector<32x1xf32>
    %c0_83 = arith.constant 0 : index
    %c0_84 = arith.constant 0 : index
    %238 = vector.load %arg2[%c0_83, %c0_84] : memref<32x4xf32, #tpu.memory_space<vmem>>, vector<32x4xf32>
    %cst_85 = arith.constant 0.000000e+00 : f32
    %239 = vector.broadcast %cst_85 : f32 to vector<32x4xf32>
    %240 = arith.cmpf ogt, %238, %239 : vector<32x4xf32>
    %cst_86 = arith.constant 0xFF800000 : f32
    %241 = vector.shape_cast %237 : vector<32x1xf32> to vector<32x1xf32>
    %242 = vector.broadcast %241 : vector<32x1xf32> to vector<32x4xf32>
    %243 = vector.broadcast %cst_86 : f32 to vector<32x4xf32>
    %244 = arith.select %240, %242, %243 : vector<32x4xi1>, vector<32x4xf32>
    %cst_87 = arith.constant dense<0xFF800000> : vector<4xf32>
    %245 = vector.multi_reduction <maximumf>, %244, %cst_87 [0] : vector<32x4xf32> to vector<4xf32>
    %246 = vector.shape_cast %245 : vector<4xf32> to vector<1x4xf32>
    %cst_88 = arith.constant 0x7F800000 : f32
    %247 = vector.shape_cast %237 : vector<32x1xf32> to vector<32x1xf32>
    %248 = vector.broadcast %247 : vector<32x1xf32> to vector<32x4xf32>
    %249 = vector.broadcast %cst_88 : f32 to vector<32x4xf32>
    %250 = arith.select %240, %248, %249 : vector<32x4xi1>, vector<32x4xf32>
    %cst_89 = arith.constant dense<0x7F800000> : vector<4xf32>
    %251 = vector.multi_reduction <minimumf>, %250, %cst_89 [0] : vector<32x4xf32> to vector<4xf32>
    %252 = vector.shape_cast %251 : vector<4xf32> to vector<1x4xf32>
    %cst_90 = arith.constant 0xFF800000 : f32
    %253 = vector.shape_cast %246 : vector<1x4xf32> to vector<1x4xf32>
    %254 = vector.broadcast %253 : vector<1x4xf32> to vector<32x4xf32>
    %255 = vector.broadcast %cst_90 : f32 to vector<32x4xf32>
    %256 = arith.select %240, %254, %255 : vector<32x4xi1>, vector<32x4xf32>
    %cst_91 = arith.constant dense<0xFF800000> : vector<32xf32>
    %257 = vector.multi_reduction <maximumf>, %256, %cst_91 [1] : vector<32x4xf32> to vector<32xf32>
    %258 = vector.shape_cast %257 : vector<32xf32> to vector<32x1xf32>
    %cst_92 = arith.constant 0x7F800000 : f32
    %259 = vector.shape_cast %252 : vector<1x4xf32> to vector<1x4xf32>
    %260 = vector.broadcast %259 : vector<1x4xf32> to vector<32x4xf32>
    %261 = vector.broadcast %cst_92 : f32 to vector<32x4xf32>
    %262 = arith.select %240, %260, %261 : vector<32x4xi1>, vector<32x4xf32>
    %cst_93 = arith.constant dense<0x7F800000> : vector<32xf32>
    %263 = vector.multi_reduction <minimumf>, %262, %cst_93 [1] : vector<32x4xf32> to vector<32xf32>
    %264 = vector.shape_cast %263 : vector<32xf32> to vector<32x1xf32>
    %265 = arith.subf %237, %264 : vector<32x1xf32>
    %cst_94 = arith.constant 9.99999997E-7 : f32
    %266 = vector.broadcast %cst_94 : f32 to vector<32x1xf32>
    %267 = arith.addf %258, %266 : vector<32x1xf32>
    %268 = arith.subf %267, %264 : vector<32x1xf32>
    %269 = arith.divf %265, %268 : vector<32x1xf32>
    %c0_95 = arith.constant 0 : index
    %c0_96 = arith.constant 0 : index
    %270 = vector.load %arg13[%c0_95, %c0_96] : memref<32x1xf32, #tpu.memory_space<vmem>>, vector<32x1xf32>
    tpu.vector_store %arg13[%c0_95, %c0_96], %269 {strides = array<i32>} : memref<32x1xf32, #tpu.memory_space<vmem>>, vector<32x1xf32>,
    return
  }
}

</mosaic_0001>

<bundles_post_ra>
// kernel: tpu_custom_call.1
= control target key start
LH: loop header
LB: loop body
LE: loop exit
PB: predicated region body
PF: predicated region fallthrough
CT: control target
= control target key end

     0   :  { %s3795_s0 = inlined_call_operand.hbm [shape: f32[32,1], index: 0, kind: input, shape index: {}]   ;;  %s3796_s1 = inlined_call_operand.hbm [shape: bf16[32,32], index: 1, kind: input, shape index: {}]   ;;  %s3797_s2 = inlined_call_operand.hbm [shape: f32[32,4], index: 2, kind: input, shape index: {}]   ;;  %s3798_s3 = inlined_call_operand.hbm [shape: f32[1,128], index: 3, kind: input, shape index: {}]   ;;  %s3799_s4 = inlined_call_operand.hbm [shape: f32[128,128], index: 4, kind: input, shape index: {}]   ;;  %s3800_s5 = inlined_call_operand.hbm [shape: f32[6,128], index: 5, kind: input, shape index: {}]   ;;  %s3801_s6 = inlined_call_operand.hbm [shape: f32[3,128,128], index: 6, kind: input, shape index: {}]   ;;  %s3802_s7 = inlined_call_operand.hbm [shape: f32[3,128,128], index: 7, kind: input, shape index: {}]   ;;  %s3803_s8 = inlined_call_operand.hbm [shape: f32[3,6,128], index: 8, kind: input, shape index: {}]   ;;  %s3804_s9 = inlined_call_operand.hbm [shape: f32[128,16], index: 9, kind: input, shape index: {}]   ;;  %s3805_s10 = inlined_call_operand.hbm [shape: f32[1,16], index: 10, kind: input, shape index: {}]   ;;  %s3806_s11 = inlined_call_operand.hbm [shape: f32[1,16], index: 11, kind: input, shape index: {}]   ;;  %s3807_s12 = inlined_call_operand.<no memory space> [shape: f32[1,1], index: 12, kind: input, shape index: {}]   ;;  %s3808_s13 = inlined_call_operand.hbm [shape: f32[32,1], index: 13, kind: output, shape index: {}]  }
   0x1   :  { %v18_v0 = vstv %s3807_s12 }
   0x2   :  { %19 = vst [vmem:[#allocation2] sm:$0x1] %v18_v0 }
   0x3   :  { %20 = vsyncpa [#allocation4], 0 }
   0x4   :  { %21 = vsyncpa [#allocation7], 0 }
   0x5   :  { %22 = vsyncpa [#allocation10], 0 }
   0x6   :  { %23 = vsyncpa [#allocation13], 0 }
   0x7   :  { %24 = vsyncpa [#allocation16], 0 }
   0x8   :  { %25 = vsyncpa [#allocation19], 0 }
   0x9   :  { %26 = vsyncpa [#allocation22], 0 }
   0xa   :  { %27 = vsyncpa [#allocation5], 0  ;;  %s3166_s27 = smov [#allocation6]   ;;  %s2864_s14 = scalar_lea.hbm %s3796_s1, 256 }
   0xb   :  { %s45_s28 = sshll.u32 %s3166_s27, 4  ;;  %p2865_p0 = scmp.ne.s32.totalorder %s3796_s1, %s2864_s14  ;;  %s46_s28 = int_to_ptr.vmem [resolvable:$true] %s45_s28 }
   0xc   :  { %p2868_p1 = scmp.lt.u32.totalorder %s2864_s14, %s3796_s1 }
   0xe   :  { %p2870_p2 = pnand %p2868_p1, %p2865_p0 }
  0x10   :  { %2873 = shalt.err (!%p2870_p2)
}
  0x11   :  { %s2874_s18 = scalar_lea.vmem %s46_s28, 256  ;;  %p2879_p4 = scmp.lt.s32.totalorder %s46_s28, %s46_s28 }
  0x12   :  { %p2875_p3 = scmp.ne.s32.totalorder %s46_s28, %s2874_s18  ;;  %p2880_p5 = scmp.lt.s32.totalorder %s2874_s18, %s2874_s18 }
  0x14   :  { %p2881_p6 = por %p2880_p5, %p2879_p4 }
  0x16   :  { %p2882_p7 = pnand %p2881_p6, %p2875_p3 }
  0x18   :  { %2885 = shalt.err (!%p2882_p7)
}
  0x19   :  { %s3167_s19 = smov 64   ;;  %s3168_s20 = smov 4  }
  0x1a   :  { %51 = dma.hbm_to_vmem [thread:$0]  %s3796_s1, 256, %s46_s28, [#allocation7], %s3167_s19, %s3167_s19, %s3168_s20  }
  0x1b   :  { %s3169_s23 = smov [#allocation9]   ;;  %s3170_s25 = smov [#allocation12]  }
  0x1c   :  { %s70_s24 = sshll.u32 %s3169_s23, 4  ;;  %s92_s26 = sshll.u32 %s3170_s25, 4  ;;  %s71_s24 = int_to_ptr.vmem [resolvable:$true] %s70_s24  ;;  %s93_s26 = int_to_ptr.vmem [resolvable:$true] %s92_s26 }
  0x1d   :  { %s2886_s30 = scalar_lea.hbm %s3798_s3, 16 }
  0x1e   :  { %p2887_p8 = scmp.ne.s32.totalorder %s3798_s3, %s2886_s30  ;;  %p2890_p9 = scmp.lt.u32.totalorder %s2886_s30, %s3798_s3 }
  0x20   :  { %p2892_p10 = pnand %p2890_p9, %p2887_p8 }
  0x22   :  { %2895 = shalt.err (!%p2892_p10)
}
  0x23   :  { %s2896_s1 = scalar_lea.vmem %s71_s24, 16  ;;  %s2900_s28 = scalar_lea.vmem %s71_s24, 32 }
  0x24   :  { %p2897_p11 = scmp.ne.s32.totalorder %s71_s24, %s2896_s1  ;;  %p2901_p12 = scmp.lt.s32.totalorder %s71_s24, %s71_s24 }
  0x25   :  { %p2902_p13 = scmp.lt.s32.totalorder %s2900_s28, %s2896_s1 }
  0x27   :  { %p2903_p0 = por %p2902_p13, %p2901_p12 }
  0x29   :  { %p2904_p1 = pnand %p2903_p0, %p2897_p11 }
  0x2b   :  { %2907 = shalt.err (!%p2904_p1)
}
  0x2c   :  { %73 = dma.hbm_to_vmem [thread:$0]  %s3798_s3, 16, %s71_s24, [#allocation10]  }
  0x2d   :  { %s2908_s21 = scalar_lea.hbm %s3800_s5, 128 }
  0x2e   :  { %p2909_p2 = scmp.ne.s32.totalorder %s3800_s5, %s2908_s21  ;;  %p2912_p3 = scmp.lt.u32.totalorder %s2908_s21, %s3800_s5 }
  0x30   :  { %p2914_p4 = pnand %p2912_p3, %p2909_p2 }
  0x32   :  { %2917 = shalt.err (!%p2914_p4)
}
  0x33   :  { %s2918_s29 = scalar_lea.vmem %s93_s26, 128  ;;  %p2923_p6 = scmp.lt.s32.totalorder %s93_s26, %s93_s26 }
  0x34   :  { %p2919_p5 = scmp.ne.s32.totalorder %s93_s26, %s2918_s29  ;;  %p2924_p7 = scmp.lt.s32.totalorder %s2918_s29, %s2918_s29 }
  0x36   :  { %p2925_p8 = por %p2924_p7, %p2923_p6 }
  0x38   :  { %p2926_p9 = pnand %p2925_p8, %p2919_p5 }
  0x3a   :  { %2929 = shalt.err (!%p2926_p9)
}
  0x3b   :  { %95 = dma.hbm_to_vmem [thread:$0]  %s3800_s5, 128, %s93_s26, [#allocation13]  }
  0x3c   :  { %s3171_s30 = smov [#allocation15]   ;;  %s3172_s15 = smov [#allocation18]  }
  0x3d   :  { %s113_s14 = sshll.u32 %s3171_s30, 4  ;;  %s137_s16 = sshll.u32 %s3172_s15, 4  ;;  %s114_s14 = int_to_ptr.vmem [resolvable:$true] %s113_s14  ;;  %s138_s16 = int_to_ptr.vmem [resolvable:$true] %s137_s16 }
  0x3e   :  { %s2930_s28 = scalar_lea.hbm %s3802_s7, 6144 }
  0x3f   :  { %p2931_p10 = scmp.ne.s32.totalorder %s3802_s7, %s2930_s28  ;;  %p2934_p11 = scmp.lt.u32.totalorder %s2930_s28, %s3802_s7 }
  0x41   :  { %p2936_p12 = pnand %p2934_p11, %p2931_p10 }
  0x43   :  { %2939 = shalt.err (!%p2936_p12)
}
  0x44   :  { %s2940_s5 = scalar_lea.vmem %s114_s14, 6144  ;;  %p2945_p0 = scmp.lt.s32.totalorder %s114_s14, %s114_s14 }
  0x45   :  { %p2941_p13 = scmp.ne.s32.totalorder %s114_s14, %s2940_s5  ;;  %p2946_p1 = scmp.lt.s32.totalorder %s2940_s5, %s2940_s5 }
  0x47   :  { %p2947_p2 = por %p2946_p1, %p2945_p0 }
  0x49   :  { %p2948_p3 = pnand %p2947_p2, %p2941_p13 }
  0x4b   :  { %2951 = shalt.err (!%p2948_p3)
}
  0x4c   :  { %s3173_s26 = smov 128   ;;  %s3174_s21 = smov 8  }
  0x4d   :  { %119 = dma.hbm_to_vmem [thread:$0]  %s3802_s7, 6144, %s114_s14, [#allocation16], %s3173_s26, %s3173_s26, %s3174_s21  }
  0x4e   :  { %s2952_s29 = scalar_lea.hbm %s3804_s9, 2048 }
  0x4f   :  { %p2953_p4 = scmp.ne.s32.totalorder %s3804_s9, %s2952_s29  ;;  %p2956_p5 = scmp.lt.u32.totalorder %s2952_s29, %s3804_s9 }
  0x51   :  { %p2958_p6 = pnand %p2956_p5, %p2953_p4 }
  0x53   :  { %2961 = shalt.err (!%p2958_p6)
}
  0x54   :  { %s2962_s12 = scalar_lea.vmem %s138_s16, 2048  ;;  %p2967_p8 = scmp.lt.s32.totalorder %s138_s16, %s138_s16 }
  0x55   :  { %p2963_p7 = scmp.ne.s32.totalorder %s138_s16, %s2962_s12  ;;  %p2968_p9 = scmp.lt.s32.totalorder %s2962_s12, %s2962_s12 }
  0x57   :  { %p2969_p10 = por %p2968_p9, %p2967_p8 }
  0x59   :  { %p2970_p11 = pnand %p2969_p10, %p2963_p7 }
  0x5b   :  { %2973 = shalt.err (!%p2970_p11)
}
  0x5c   :  { %143 = dma.hbm_to_vmem [thread:$0]  %s3804_s9, 2048, %s138_s16, [#allocation19], %s3173_s26, %s3173_s26, %s3174_s21  }
  0x5d   :  { %s3175_s1 = smov [#allocation3]   ;;  %s3176_s17 = smov [#allocation8]  }
  0x5e   :  { %s33_s28 = sshll.u32 %s3175_s1, 4  ;;  %s57_s18 = sshll.u32 %s3176_s17, 4  ;;  %s34_s28 = int_to_ptr.vmem [resolvable:$true] %s33_s28  ;;  %s58_s18 = int_to_ptr.vmem [resolvable:$true] %s57_s18 }
  0x5f   :  { %s2974_s5 = scalar_lea.hbm %s3795_s0, 512 }
  0x60   :  { %p2975_p12 = scmp.ne.s32.totalorder %s3795_s0, %s2974_s5  ;;  %p2978_p13 = scmp.lt.u32.totalorder %s2974_s5, %s3795_s0 }
  0x62   :  { %p2980_p0 = pnand %p2978_p13, %p2975_p12 }
  0x64   :  { %2983 = shalt.err (!%p2980_p0)
}
  0x65   :  { %s2984_s9 = scalar_lea.vmem %s34_s28, 512  ;;  %p2989_p2 = scmp.lt.s32.totalorder %s34_s28, %s34_s28 }
  0x66   :  { %p2985_p1 = scmp.ne.s32.totalorder %s34_s28, %s2984_s9  ;;  %p2990_p3 = scmp.lt.s32.totalorder %s2984_s9, %s2984_s9 }
  0x68   :  { %p2991_p4 = por %p2990_p3, %p2989_p2 }
  0x6a   :  { %p2992_p5 = pnand %p2991_p4, %p2985_p1 }
  0x6c   :  { %2995 = shalt.err (!%p2992_p5)
}
  0x6d   :  { %39 = dma.hbm_to_vmem [thread:$0]  %s3795_s0, 512, %s34_s28, [#allocation4], %s3173_s26, %s3173_s26, %s3174_s21  }
  0x6e   :  { %s2996_s30 = scalar_lea.hbm %s3797_s2, 512 }
  0x6f   :  { %p2997_p6 = scmp.ne.s32.totalorder %s3797_s2, %s2996_s30  ;;  %p3000_p7 = scmp.lt.u32.totalorder %s2996_s30, %s3797_s2 }
  0x71   :  { %p3002_p8 = pnand %p3000_p7, %p2997_p6 }
  0x73   :  { %3005 = shalt.err (!%p3002_p8)
}
  0x74   :  { %s3006_s1 = scalar_lea.vmem %s58_s18, 512  ;;  %p3011_p10 = scmp.lt.s32.totalorder %s58_s18, %s58_s18 }
  0x75   :  { %p3007_p9 = scmp.ne.s32.totalorder %s58_s18, %s3006_s1  ;;  %p3012_p11 = scmp.lt.s32.totalorder %s3006_s1, %s3006_s1 }
  0x77   :  { %p3013_p12 = por %p3012_p11, %p3011_p10 }
  0x79   :  { %p3014_p13 = pnand %p3013_p12, %p3007_p9 }
  0x7b   :  { %3017 = shalt.err (!%p3014_p13)
}
  0x7c   :  { %63 = dma.hbm_to_vmem [thread:$0]  %s3797_s2, 512, %s58_s18, [#allocation7], %s3173_s26, %s3173_s26, %s3174_s21  }
  0x7d   :  { %s3177_s17 = smov [#allocation11]   ;;  %s3178_s20 = smov [#allocation14]  }
  0x7e   :  { %s79_s19 = sshll.u32 %s3177_s17, 4  ;;  %s101_s5 = sshll.u32 %s3178_s20, 4  ;;  %s80_s19 = int_to_ptr.vmem [resolvable:$true] %s79_s19  ;;  %s102_s5 = int_to_ptr.vmem [resolvable:$true] %s101_s5 }
  0x7f   :  { %s3018_s25 = scalar_lea.hbm %s3799_s4, 2048 }
  0x80   :  { %p3019_p0 = scmp.ne.s32.totalorder %s3799_s4, %s3018_s25  ;;  %p3022_p1 = scmp.lt.u32.totalorder %s3018_s25, %s3799_s4 }
  0x82   :  { %p3024_p2 = pnand %p3022_p1, %p3019_p0 }
  0x84   :  { %3027 = shalt.err (!%p3024_p2)
}
  0x85   :  { %s3028_s2 = scalar_lea.vmem %s80_s19, 2048  ;;  %p3033_p4 = scmp.lt.s32.totalorder %s80_s19, %s80_s19 }
  0x86   :  { %p3029_p3 = scmp.ne.s32.totalorder %s80_s19, %s3028_s2  ;;  %p3034_p5 = scmp.lt.s32.totalorder %s3028_s2, %s3028_s2 }
  0x88   :  { %p3035_p6 = por %p3034_p5, %p3033_p4 }
  0x8a   :  { %p3036_p7 = pnand %p3035_p6, %p3029_p3 }
  0x8c   :  { %3039 = shalt.err (!%p3036_p7)
}
  0x8d   :  { %85 = dma.hbm_to_vmem [thread:$0]  %s3799_s4, 2048, %s80_s19, [#allocation10], %s3173_s26, %s3173_s26, %s3174_s21  }
  0x8e   :  { %s3040_s15 = scalar_lea.hbm %s3801_s6, 6144 }
  0x8f   :  { %p3041_p8 = scmp.ne.s32.totalorder %s3801_s6, %s3040_s15  ;;  %p3044_p9 = scmp.lt.u32.totalorder %s3040_s15, %s3801_s6 }
  0x91   :  { %p3046_p10 = pnand %p3044_p9, %p3041_p8 }
  0x93   :  { %3049 = shalt.err (!%p3046_p10)
}
  0x94   :  { %s3050_s0 = scalar_lea.vmem %s102_s5, 6144  ;;  %p3055_p12 = scmp.lt.s32.totalorder %s102_s5, %s102_s5 }
  0x95   :  { %p3051_p11 = scmp.ne.s32.totalorder %s102_s5, %s3050_s0  ;;  %p3056_p13 = scmp.lt.s32.totalorder %s3050_s0, %s3050_s0 }
  0x97   :  { %p3057_p0 = por %p3056_p13, %p3055_p12 }
  0x99   :  { %p3058_p1 = pnand %p3057_p0, %p3051_p11 }
  0x9b   :  { %3061 = shalt.err (!%p3058_p1)
}
  0x9c   :  { %107 = dma.hbm_to_vmem [thread:$0]  %s3801_s6, 6144, %s102_s5, [#allocation13], %s3173_s26, %s3173_s26, %s3174_s21  }
  0x9d   :  { %s3179_s17 = smov [#allocation17]   ;;  %s3180_s20 = smov [#allocation20]  }
  0x9e   :  { %s125_s19 = sshll.u32 %s3179_s17, 4  ;;  %s150_s22 = sshll.u32 %s3180_s20, 4  ;;  %s126_s19 = int_to_ptr.vmem [resolvable:$true] %s125_s19  ;;  %s151_s22 = int_to_ptr.vmem [resolvable:$true] %s150_s22 }
  0x9f   :  { %s3062_s27 = scalar_lea.hbm %s3803_s8, 384 }
  0xa0   :  { %p3063_p2 = scmp.ne.s32.totalorder %s3803_s8, %s3062_s27  ;;  %p3066_p3 = scmp.lt.u32.totalorder %s3062_s27, %s3803_s8 }
  0xa2   :  { %p3068_p4 = pnand %p3066_p3, %p3063_p2 }
  0xa4   :  { %3071 = shalt.err (!%p3068_p4)
}
  0xa5   :  { %s3072_s6 = scalar_lea.vmem %s126_s19, 384  ;;  %p3077_p6 = scmp.lt.s32.totalorder %s126_s19, %s126_s19 }
  0xa6   :  { %p3073_p5 = scmp.ne.s32.totalorder %s126_s19, %s3072_s6  ;;  %p3078_p7 = scmp.lt.s32.totalorder %s3072_s6, %s3072_s6 }
  0xa8   :  { %p3079_p8 = por %p3078_p7, %p3077_p6 }
  0xaa   :  { %p3080_p9 = pnand %p3079_p8, %p3073_p5 }
  0xac   :  { %3083 = shalt.err (!%p3080_p9)
}
  0xad   :  { %131 = dma.hbm_to_vmem [thread:$0]  %s3803_s8, 384, %s126_s19, [#allocation16], %s3173_s26, %s3173_s26, %s3174_s21  }
  0xae   :  { %s3084_s30 = scalar_lea.hbm %s3805_s10, 16 }
  0xaf   :  { %p3085_p10 = scmp.ne.s32.totalorder %s3805_s10, %s3084_s30  ;;  %p3088_p11 = scmp.lt.u32.totalorder %s3084_s30, %s3805_s10 }
  0xb1   :  { %p3090_p12 = pnand %p3088_p11, %p3085_p10 }
  0xb3   :  { %3093 = shalt.err (!%p3090_p12)
}
  0xb4   :  { %s3094_s1 = scalar_lea.vmem %s151_s22, 16  ;;  %s3098_s0 = scalar_lea.vmem %s151_s22, 32 }
  0xb5   :  { %p3095_p13 = scmp.ne.s32.totalorder %s151_s22, %s3094_s1  ;;  %p3099_p0 = scmp.lt.s32.totalorder %s151_s22, %s151_s22 }
  0xb6   :  { %p3100_p1 = scmp.lt.s32.totalorder %s3098_s0, %s3094_s1 }
  0xb8   :  { %p3101_p2 = por %p3100_p1, %p3099_p0 }
  0xba   :  { %p3102_p3 = pnand %p3101_p2, %p3095_p13 }
  0xbc   :  { %3105 = shalt.err (!%p3102_p3)
}
  0xbd   :  { %153 = dma.hbm_to_vmem [thread:$0]  %s3805_s10, 16, %s151_s22, [#allocation19]  }
  0xbe   :  { %s3181_s28 = smov [#allocation21]   ;;  %s3106_s23 = scalar_lea.hbm %s3806_s11, 16 }
  0xbf   :  { %s160_s17 = sshll.u32 %s3181_s28, 4  ;;  %p3107_p4 = scmp.ne.s32.totalorder %s3806_s11, %s3106_s23  ;;  %s161_s17 = int_to_ptr.vmem [resolvable:$true] %s160_s17 }
  0xc0   :  { %p3110_p5 = scmp.lt.u32.totalorder %s3106_s23, %s3806_s11 }
  0xc2   :  { %p3112_p6 = pnand %p3110_p5, %p3107_p4 }
  0xc4   :  { %3115 = shalt.err (!%p3112_p6)
}
  0xc5   :  { %s3116_s29 = scalar_lea.vmem %s161_s17, 16  ;;  %s3120_s10 = scalar_lea.vmem %s161_s17, 32 }
  0xc6   :  { %p3117_p7 = scmp.ne.s32.totalorder %s161_s17, %s3116_s29  ;;  %p3121_p8 = scmp.lt.s32.totalorder %s161_s17, %s161_s17 }
  0xc7   :  { %p3122_p9 = scmp.lt.s32.totalorder %s3120_s10, %s3116_s29 }
  0xc9   :  { %p3123_p10 = por %p3122_p9, %p3121_p8 }
  0xcb   :  { %p3124_p11 = pnand %p3123_p10, %p3117_p7 }
  0xcd   :  { %3127 = shalt.err (!%p3124_p11)
}
  0xce   :  { %163 = dma.hbm_to_vmem [thread:$0]  %s3806_s11, 16, %s161_s17, [#allocation22]  }
  0xcf   :  { %3150 = dma.done.wait [#allocation4], 512  }
  0xd0   :  { %3151 = vsyncadd [#allocation4], 4294966784 }
  0xd1   :  { %3152 = dma.done.wait [#allocation7], 768  }
  0xd2   :  { %3153 = vsyncadd [#allocation7], 4294966528 }
  0xd3   :  { %3154 = dma.done.wait [#allocation10], 2064  }
  0xd4   :  { %3155 = vsyncadd [#allocation10], 4294965232 }
  0xd5   :  { %3156 = dma.done.wait [#allocation13], 6272  }
  0xd6   :  { %3157 = vsyncadd [#allocation13], 4294961024 }
  0xd7   :  { %3158 = dma.done.wait [#allocation16], 6528  }
  0xd8   :  { %3159 = vsyncadd [#allocation16], 4294960768 }
  0xd9   :  { %3160 = dma.done.wait [#allocation19], 2064  }
  0xda   :  { %3161 = vsyncadd [#allocation19], 4294965232 }
  0xdb   :  { %3162 = dma.done.wait [#allocation22], 16  }
  0xdc   :  { %3163 = vsyncadd [#allocation22], 4294967280  ;;  %v3426_v1 = vld [vmem:[#allocation3] sm:$0xff]  ;;  %v3428_v2 = vld [vmem:[#allocation3 + $0x8] sm:$0xff]  ;;  %v3182_v9 = vmov 0.0   ;;  %vm261_vm4 = vcmask 261120   ;;  %v384_v63 = vlaneseq }
  0xdd   :  { %v3430_v3 = vld [vmem:[#allocation3 + $0x10] sm:$0xff]  ;;  %v211_v4 = vand.u32 2147483647, %v3426_v1  ;;  %v212_v5 = vand.u32 2147483647, %v3428_v2  ;;  %v3434_v6 = vld [vmem:[#allocation3 + $0x18] sm:$0xff] }
  0xde   :  { %v213_v7 = vand.u32 2147483647, %v3430_v3  ;;  %v214_v8 = vand.u32 2147483647, %v3434_v6  ;;  %v3444_v12 = vld [vmem:[#allocation6] sm:$0xff]   ;;  %s3183_s11 = smov 1  }
  0xdf   :  { %vm215_vm0 = vcmp.gt.f32.partialorder %v211_v4, 0.0  ;;  %vm216_vm1 = vcmp.gt.f32.partialorder %v212_v5, 0.0  ;;  %2214 = vmatprep.mubr.msk.bf16.mxu1 %vm261_vm4, %v3444_v12  ;;  %vm244_vm5 = vcmask 7168   ;;  %v3466_v29 = vld [vmem:[#allocation6 + $0x8] sm:$0xff]   ;;  %v3184_v30 = vmov 0   ;;  %v396_v31 = vld [vmem:[#allocation11] sm:$0xff] }
  0xe0   :  { %v3439_v10 = vsel %vm215_vm0, 1.0, %v3182_v9  ;;  %v3442_v11 = vsel %vm216_vm1, 1.0, %v3182_v9  ;;  %vm217_vm2 = vcmp.gt.f32.partialorder %v213_v7, 0.0  ;;  %vm218_vm3 = vcmp.gt.f32.partialorder %v214_v8, 0.0  ;;  %2810 = vset.pattern.permute.xlu0 %v3184_v30  ;;  %2811 = vset.pattern.permute.xlu1 %v3184_v30  ;;  %v397_v32 = vld [vmem:[#allocation11 + $0x8] sm:$0xff]  ;;  %v398_v33 = vld [vmem:[#allocation11 + $0x10] sm:$0xff] }
  0xe1   :  { %v2800_v13 = vpack.i.bf16 %v3442_v11, %v3439_v10  ;;  %v3449_v14 = vsel %vm217_vm2, 1.0, %v3182_v9  ;;  %v3452_v15 = vsel %vm218_vm3, 1.0, %v3182_v9  ;;  %v2522_v34 = vpack.c.bf16 %v397_v32, %v396_v31  ;;  %v399_v35 = vld [vmem:[#allocation11 + $0x18] sm:$0xff]  ;;  %v400_v37 = vld [vmem:[#allocation11 + $0x20] sm:$0xff]  ;;  %v401_v38 = vld [vmem:[#allocation11 + $0x28] sm:$0xff]  ;;  %s3185_s6 = smov 127  }
  0xe2   :  { %v2805_v16 = vpack.i.bf16 %v3452_v15, %v3449_v14  ;;  %v2526_v36 = vpack.c.bf16 %v399_v35, %v398_v33  ;;  %v2530_v39 = vpack.c.bf16 %v401_v38, %v400_v37  ;;  %v402_v40 = vld [vmem:[#allocation11 + $0x30] sm:$0xff]  ;;  %v403_v41 = vld [vmem:[#allocation11 + $0x38] sm:$0xff]  ;;  %v404_v43 = vld [vmem:[#allocation11 + $0x40] sm:$0xff]  ;;  %v3476_v0 = vshrl.u32 %v384_v63, 7  ;;  %s3187_s5 = smov [#allocation23]  }
  0xe3   :  { %2801 = vrot.lane.b32.xlu0 %v2800_v13, %s3183_s11  ;;  %v2534_v42 = vpack.c.bf16 %v403_v41, %v402_v40  ;;  %v405_v44 = vld [vmem:[#allocation11 + $0x48] sm:$0xff]  ;;  %v406_v46 = vld [vmem:[#allocation11 + $0x50] sm:$0xff]  ;;  %v407_v47 = vld [vmem:[#allocation11 + $0x58] sm:$0xff]  ;;  %v3186_v38 = vmov 1.0|1.0   ;;  %s1982_s18 = sshll.u32 %s3187_s5, 4  ;;  %s1983_s18 = int_to_ptr.vmem [resolvable:$true] %s1982_s18 }
  0xe4   :  { %v2538_v45 = vpack.c.bf16 %v405_v44, %v404_v43  ;;  %v2542_v48 = vpack.c.bf16 %v407_v47, %v406_v46  ;;  %v408_v55 = vld [vmem:[#allocation11 + $0x60] sm:$0xff]  ;;  %v409_v56 = vld [vmem:[#allocation11 + $0x68] sm:$0xff]  ;;  %v410_v59 = vld [vmem:[#allocation11 + $0x70] sm:$0xff]  ;;  %s3128_s3 = scalar_lea.vmem %s1983_s18, 512  ;;  %p3133_p13 = scmp.lt.s32.totalorder %s1983_s18, %s1983_s18 }
  0xe5   :  { %v2546_v57 = vpack.c.bf16 %v409_v56, %v408_v55  ;;  %v411_v60 = vld [vmem:[#allocation11 + $0x78] sm:$0xff]  ;;  %v577_v47 = vld [vmem:[#allocation14 + $0x20] sm:$0xff]  ;;  %p3129_p12 = scmp.ne.s32.totalorder %s1983_s18, %s3128_s3  ;;  %p3134_p0 = scmp.lt.s32.totalorder %s3128_s3, %s3128_s3 }
  0xe6   :  { %v2550_v61 = vpack.c.bf16 %v411_v60, %v410_v59  ;;  %v575_v43 = vld [vmem:[#allocation14 + $0x10] sm:$0xff]  ;;  %v585_v59 = vld [vmem:[#allocation14 + $0x60] sm:$0xff]  ;;  %v586_v60 = vld [vmem:[#allocation14 + $0x68] sm:$0xff] }
  0xe7   :  { %2806 = vrot.lane.b32.xlu0 %v2805_v16, %s3183_s11  ;;  %v583_v56 = vld [vmem:[#allocation14 + $0x50] sm:$0xff]  ;;  %p3135_p1 = por %p3134_p0, %p3133_p13 }
  0xe9   :  { %p3136_p2 = pnand %p3135_p1, %p3129_p12 }
 0x155   :  { %v2802_v17 = vpop.permute.xlu0 %2801 }
 0x156   :  { %v2804_v18 = vunpack.i.h.bf16 %v2802_v17  ;;  %v2803_v19 = vunpack.i.l.bf16 %v2802_v17 }
 0x158   :  { %v245_v20 = vsel %vm244_vm5, %v3426_v1, %v2803_v19  ;;  %v246_v21 = vsel %vm244_vm5, %v3428_v2, %v2804_v18 }
 0x159   :  { %v2807_v22 = vpop.permute.xlu0 %2806  ;;  %v249_v23 = vpack.c.bf16 %v246_v21, %v245_v20 }
 0x15a   :  { %v2809_v24 = vunpack.i.h.bf16 %v2807_v22  ;;  %v2808_v25 = vunpack.i.l.bf16 %v2807_v22 }
 0x15b   :  { %2210 = vmatprep.subr.bf16.mxu1 %v249_v23 }
 0x15c   :  { %2211 = vmatpush3.bf16.msra.mxu1 %v249_v23  ;;  %v247_v26 = vsel %vm244_vm5, %v3430_v3, %v2808_v25  ;;  %v248_v27 = vsel %vm244_vm5, %v3434_v6, %v2809_v24 }
 0x15d   :  { %v250_v28 = vpack.c.bf16 %v248_v27, %v247_v26 }
 0x15f   :  { %2212 = vmatprep.subr.bf16.mxu1 %v250_v28 }
 0x160   :  { %2213 = vmatpush3.bf16.msra.mxu1 %v250_v28 }
 0x161   :  { %2523 = vmatprep.subr.bf16.mxu1 %v2522_v34 }
 0x163   :  { %2215 = vmatmul.mubr.msk.bf16.vlgmr.msra.gmra.mrb[0].mxu1 %vm261_vm4, %v3466_v29 }
 0x164   :  { %2525 = vmatpush3.bf16.msra.mxu1 %v2522_v34 }
 0x165   :  { %2527 = vmatprep.subr.bf16.mxu1 %v2526_v36 }
 0x168   :  { %2529 = vmatpush3.bf16.msra.mxu1 %v2526_v36 }
 0x169   :  { %2531 = vmatprep.subr.bf16.mxu1 %v2530_v39 }
 0x16c   :  { %2533 = vmatpush3.bf16.msra.mxu1 %v2530_v39 }
 0x16d   :  { %2535 = vmatprep.subr.bf16.mxu1 %v2534_v42 }
 0x170   :  { %2537 = vmatpush3.bf16.msra.mxu1 %v2534_v42  ;;  %v574_v42 = vld [vmem:[#allocation14 + $0x8] sm:$0xff] }
 0x171   :  { %2539 = vmatprep.subr.bf16.mxu1 %v2538_v45 }
 0x174   :  { %2541 = vmatpush3.bf16.msra.mxu1 %v2538_v45  ;;  %v576_v45 = vld [vmem:[#allocation14 + $0x18] sm:$0xff] }
 0x175   :  { %2543 = vmatprep.subr.bf16.mxu1 %v2542_v48  ;;  %v2558_v46 = vpack.c.bf16 %v576_v45, %v575_v43 }
 0x178   :  { %2545 = vmatpush3.bf16.msra.mxu1 %v2542_v48  ;;  %v578_v48 = vld [vmem:[#allocation14 + $0x28] sm:$0xff] }
 0x179   :  { %2547 = vmatprep.subr.bf16.mxu1 %v2546_v57 }
 0x17c   :  { %2549 = vmatpush3.bf16.msra.mxu1 %v2546_v57  ;;  %v584_v57 = vld [vmem:[#allocation14 + $0x58] sm:$0xff] }
 0x17d   :  { %2551 = vmatprep.subr.bf16.mxu1 %v2550_v61 }
 0x180   :  { %2553 = vmatpush3.bf16.msra.mxu1 %v2550_v61  ;;  %v2578_v61 = vpack.c.bf16 %v586_v60, %v585_v59 }
 0x236   :  { %v2216_v49 = vpop.f32.mrb[0].mxu1 }
 0x237   :  { %v319_v50 = vadd.f32 %v2216_v49, %v3430_v3  ;;  %v302_v51 = vpop.f32.mrb[1].mxu1  ;;  %v2012_v3 = vld [vmem:[#allocation9] ss:$0 sm:$0xff] }
 0x238   :  { %v2217_v52 = vpop.f32.mrb[2].mxu1  ;;  %v317_v53 = vadd.f32 %v302_v51, %v3426_v1  ;;  %v3479_v1 = vsub.s32 0, %v3476_v0 }
 0x239   :  { %366 = vperm.xlu0 %2810, %v319_v50   ;;  %v305_v54 = vpop.f32.mrb[3].mxu1  ;;  %v320_v62 = vadd.f32 %v2217_v52, %v3434_v6  ;;  %v579_v50 = vld [vmem:[#allocation14 + $0x30] sm:$0xff] }
 0x23a   :  { %356 = vperm.xlu1 %2811, %v317_v53   ;;  %v318_v58 = vadd.f32 %v305_v54, %v3428_v2  ;;  %v3481_v2 = vld [vmem:[#allocation12] sm:$0x3f]  ;;  %v581_v53 = vld [vmem:[#allocation14 + $0x40] sm:$0xff] }
 0x23b   :  { %v387_v4 = vrot.slane %v3481_v2, %v3479_v1 }
 0x23d   :  { %327 = vrot.lane.b32.xlu0 %v305_v54, %s3185_s6  ;;  %v582_v54 = vld [vmem:[#allocation14 + $0x48] sm:$0xff] }
 0x23e   :  { %361 = vperm.xlu1 %2811, %v318_v58   ;;  %v2570_v55 = vpack.c.bf16 %v582_v54, %v581_v53  ;;  %v2574_v58 = vpack.c.bf16 %v584_v57, %v583_v56 }
 0x241   :  { %331 = vrot.lane.b32.xlu0 %v2217_v52, %s3185_s6 }
 0x242   :  { %371 = vperm.xlu1 %2811, %v320_v62   ;;  %v3512_v62 = vsub.s32 1, %v3476_v0 }
 0x244   :  { %v415_v63 = vrot.slane %v3481_v2, %v3512_v62 }
 0x246   :  { %325 = vrot.lane.b32.xlu1 %v302_v51, %s3185_s6  ;;  %v580_v51 = vld [vmem:[#allocation14 + $0x38] sm:$0xff] }
 0x247   :  { %v2566_v52 = vpack.c.bf16 %v580_v51, %v579_v50 }
 0x24a   :  { %329 = vrot.lane.b32.xlu1 %v2216_v49, %s3185_s6  ;;  %v2562_v49 = vpack.c.bf16 %v578_v48, %v577_v47 }
 0x2b8   :  { %v367_v5 = vpop.permute.xlu0 %366 }
 0x2b9   :  { %v357_v6 = vpop.permute.xlu1 %356  ;;  %v382_v8 = vmul.f32 %v2012_v3, %v367_v5 }
 0x2ba   :  { %v380_v7 = vmul.f32 %v2012_v3, %v357_v6 }
 0x2bb   :  { %v390_v20 = vadd.f32 %v387_v4, %v382_v8 }
 0x2bc   :  { %v388_v13 = vadd.f32 %v387_v4, %v380_v7  ;;  %v328_v16 = vpop.permute.xlu0 %327 }
 0x2bd   :  { %v362_v17 = vpop.permute.xlu1 %361  ;;  %v338_v23 = vadd.f32 %v3442_v11, %v328_v16  ;;  %v394_v26 = vmax.f32 %v390_v20, 0.0 }
 0x2be   :  { %v392_v18 = vmax.f32 %v388_v13, 0.0  ;;  %v381_v19 = vmul.f32 %v2012_v3, %v362_v17 }
 0x2bf   :  { %vm342_vm6 = vcmp.gt.f32.partialorder %v338_v23, 0.0 }
 0x2c0   :  { %v389_v21 = vadd.f32 %v387_v4, %v381_v19  ;;  %2250 = vmatprep.mubr.f32.mxu1 %v392_v18  ;;  %v332_v27 = vpop.permute.xlu0 %331  ;;  %v3489_v35 = vsel %vm342_vm6, 1.0, %v3182_v9 }
 0x2c1   :  { %v372_v22 = vpop.permute.xlu1 %371  ;;  %v340_v32 = vadd.f32 %v3452_v15, %v332_v27 }
 0x2c2   :  { %v393_v24 = vmax.f32 %v389_v21, 0.0  ;;  %v383_v25 = vmul.f32 %v2012_v3, %v372_v22  ;;  %v3517_v3 = vsub.s32 2, %v3476_v0  ;;  %v3527_v21 = vsub.s32 4, %v3476_v0 }
 0x2c3   :  { %vm344_vm9 = vcmp.gt.f32.partialorder %v340_v32, 0.0 }
 0x2c4   :  { %v391_v28 = vadd.f32 %v387_v4, %v383_v25  ;;  %2251 = vmatmul.mubr.f32.vlgmr.msra.gmra.mrb[4].mxu1 %v393_v24  ;;  %v3520_v4 = vsub.s32 3, %v3476_v0  ;;  %v508_v7 = vrot.slane %v3481_v2, %v3517_v3 }
 0x2c5   :  { %2253 = vmatprep.mubr.f32.mxu1 %v394_v26  ;;  %v326_v31 = vpop.permute.xlu1 %325 }
 0x2c6   :  { %v395_v33 = vmax.f32 %v391_v28, 0.0  ;;  %v337_v34 = vadd.f32 %v3439_v10, %v326_v31  ;;  %v3500_v10 = vsel %vm344_vm9, 1.0, %v3182_v9  ;;  %v516_v17 = vrot.slane %v3481_v2, %v3520_v4 }
 0x2c8   :  { %vm341_vm7 = vcmp.gt.f32.partialorder %v337_v34, 0.0  ;;  %2254 = vmatmul.mubr.f32.gmra.mrb[6].mxu1 %v395_v33  ;;  %v3530_v33 = vsub.s32 5, %v3476_v0 }
 0x2c9   :  { %v3492_v11 = vsel %vm341_vm7, 1.0, %v3182_v9  ;;  %vm2013_vm8 = vmpackc.low %vm342_vm6, %vm341_vm7  ;;  %v330_v36 = vpop.permute.xlu1 %329  ;;  %642 = vmatprep.mubr.bf16.mxu1 %v3184_v30 }
 0x2ca   :  { %v2812_v37 = vpack.i.bf16 %v3489_v35, %v3492_v11  ;;  %v339_v15 = vadd.f32 %v3449_v14, %v330_v36  ;;  %2014 = vmatprep.subr.msk.bf16.mxu1 %vm2013_vm8, %v3186_v38  ;;  %v573_v14 = vld [vmem:[#allocation14] sm:$0xff]  ;;  %v560_v36 = vrot.slane %v3481_v2, %v3527_v21  ;;  %v568_v0 = vrot.slane %v3481_v2, %v3530_v33 }
 0x2cb   :  { %v2554_v44 = vpack.c.bf16 %v574_v42, %v573_v14 }
 0x2cc   :  { %vm343_vm10 = vcmp.gt.f32.partialorder %v339_v15, 0.0  ;;  %2813 = vperm.xlu1 %2811, %v2812_v37  }
 0x2cd   :  { %v3503_v39 = vsel %vm343_vm10, 1.0, %v3182_v9  ;;  %vm3505_vm11 = vmpackc.low %vm344_vm9, %vm343_vm10  ;;  %2555 = vmatprep.subr.bf16.mxu0 %v2554_v44 }
 0x2ce   :  { %v2817_v41 = vpack.i.bf16 %v3500_v10, %v3503_v39  ;;  %2557 = vmatpush3.bf16.msra.mxu0 %v2554_v44 }
 0x2cf   :  { %2559 = vmatprep.subr.bf16.mxu0 %v2558_v46 }
 0x2d0   :  { %2818 = vperm.xlu0 %2810, %v2817_v41  }
 0x2d2   :  { %2561 = vmatpush3.bf16.msra.mxu0 %v2558_v46 }
 0x2d3   :  { %2563 = vmatprep.subr.bf16.mxu0 %v2562_v49 }
 0x2d6   :  { %2565 = vmatpush3.bf16.msra.mxu0 %v2562_v49 }
 0x2d7   :  { %2567 = vmatprep.subr.bf16.mxu0 %v2566_v52 }
 0x2da   :  { %2569 = vmatpush3.bf16.msra.mxu0 %v2566_v52 }
 0x2db   :  { %2571 = vmatprep.subr.bf16.mxu0 %v2570_v55 }
 0x2de   :  { %2573 = vmatpush3.bf16.msra.mxu0 %v2570_v55 }
 0x2df   :  { %2575 = vmatprep.subr.bf16.mxu0 %v2574_v58 }
 0x2e2   :  { %2577 = vmatpush3.bf16.msra.mxu0 %v2574_v58 }
 0x2e3   :  { %2579 = vmatprep.subr.bf16.mxu0 %v2578_v61 }
 0x2e6   :  { %2581 = vmatpush3.bf16.msra.mxu0 %v2578_v61 }
 0x34b   :  { %v2814_v26 = vpop.permute.xlu1 %2813 }
 0x34c   :  { %v2816_v15 = vunpack.i.h.bf16 %v2814_v26  ;;  %v2815_v42 = vunpack.i.l.bf16 %v2814_v26 }
 0x34f   :  { %v2819_v43 = vpop.permute.xlu0 %2818 }
 0x350   :  { %v2821_v51 = vunpack.i.h.bf16 %v2819_v43  ;;  %v2820_v54 = vunpack.i.l.bf16 %v2819_v43  ;;  %v589_v43 = vld [vmem:[#allocation15] sm:$0xff] }
 0x397   :  { %v2252_v5 = vpop.f32.mrb[4].mxu1 }
 0x398   :  { %v488_v6 = vadd.f32 %v2252_v5, %v415_v63  ;;  %v482_v8 = vpop.f32.mrb[5].mxu1 }
 0x399   :  { %v483_v13 = vadd.f32 %v482_v8, %v415_v63 }
 0x39a   :  { %v502_v16 = vmax.f32 %v488_v6, 0.0 }
 0x39b   :  { %v501_v18 = vmax.f32 %v483_v13, 0.0  ;;  %v2255_v19 = vpop.f32.mrb[6].mxu1  ;;  %v587_v13 = vld [vmem:[#allocation14 + $0x70] sm:$0xff] }
 0x39c   :  { %v510_v20 = vmul.f32 %v508_v7, %v502_v16  ;;  %v498_v22 = vadd.f32 %v2255_v19, %v415_v63  ;;  %v492_v23 = vpop.f32.mrb[7].mxu1  ;;  %v588_v16 = vld [vmem:[#allocation14 + $0x78] sm:$0xff] }
 0x39d   :  { %v509_v24 = vmul.f32 %v508_v7, %v501_v18  ;;  %v493_v25 = vadd.f32 %v492_v23, %v415_v63 }
 0x39e   :  { %v518_v27 = vadd.f32 %v516_v17, %v510_v20  ;;  %v504_v28 = vmax.f32 %v498_v22, 0.0 }
 0x39f   :  { %v517_v31 = vadd.f32 %v516_v17, %v509_v24  ;;  %v503_v32 = vmax.f32 %v493_v25, 0.0 }
 0x3a0   :  { %vm522_vm12 = vcmp.gt.f32.partialorder %v518_v27, 0.0  ;;  %v526_v34 = vmul.f32 0.01, %v518_v27  ;;  %v512_v37 = vmul.f32 %v508_v7, %v504_v28 }
 0x3a1   :  { %vm521_vm13 = vcmp.gt.f32.partialorder %v517_v31, 0.0  ;;  %v525_v41 = vmul.f32 0.01, %v517_v31  ;;  %v511_v14 = vmul.f32 %v508_v7, %v503_v32 }
 0x3a2   :  { %v530_v44 = vsel %vm522_vm12, %v518_v27, %v526_v34  ;;  %v520_v45 = vadd.f32 %v516_v17, %v512_v37 }
 0x3a3   :  { %v554_v46 = vmul.f32 %v2816_v15, %v530_v44  ;;  %v529_v47 = vsel %vm521_vm13, %v517_v31, %v525_v41  ;;  %v519_v48 = vadd.f32 %v516_v17, %v511_v14  ;;  %v2582_v17 = vpack.c.bf16 %v588_v16, %v587_v13  ;;  %v591_v44 = vld [vmem:[#allocation15 + $0x10] sm:$0xff]  ;;  %v605_v16 = vld [vmem:[#allocation17] sm:$0x3f] }
 0x3a4   :  { %v553_v49 = vmul.f32 %v2815_v42, %v529_v47  ;;  %vm524_vm14 = vcmp.gt.f32.partialorder %v520_v45, 0.0  ;;  %v528_v50 = vmul.f32 0.01, %v520_v45 }
 0x3a5   :  { %v562_v52 = vmul.f32 %v560_v36, %v554_v46  ;;  %vm523_vm15 = vcmp.gt.f32.partialorder %v519_v48, 0.0  ;;  %v527_v53 = vmul.f32 0.01, %v519_v48  ;;  %2583 = vmatprep.subr.bf16.mxu0 %v2582_v17  ;;  %v592_v46 = vld [vmem:[#allocation15 + $0x18] sm:$0xff] }
 0x3a6   :  { %v561_v55 = vmul.f32 %v560_v36, %v553_v49  ;;  %v532_v56 = vsel %vm524_vm14, %v520_v45, %v528_v50  ;;  %2585 = vmatpush3.bf16.msra.mxu0 %v2582_v17  ;;  %v2590_v47 = vpack.c.bf16 %v592_v46, %v591_v44  ;;  %v595_v50 = vld [vmem:[#allocation15 + $0x30] sm:$0xff]  ;;  %v670_v17 = vrot.slane %v605_v16, %v3479_v1 }
 0x3a7   :  { %v556_v57 = vmul.f32 %v2821_v51, %v532_v56  ;;  %v531_v58 = vsel %vm523_vm15, %v519_v48, %v527_v53  ;;  %v3536_v59 = vadd.f32 %v568_v0, %v562_v52  ;;  %v593_v48 = vld [vmem:[#allocation15 + $0x20] sm:$0xff]  ;;  %v596_v51 = vld [vmem:[#allocation15 + $0x38] sm:$0xff]  ;;  %v599_v56 = vld [vmem:[#allocation15 + $0x50] sm:$0xff] }
 0x3a8   :  { %v555_v60 = vmul.f32 %v2820_v54, %v531_v58  ;;  %v3538_v61 = vadd.f32 %v568_v0, %v561_v55  ;;  %v2598_v52 = vpack.c.bf16 %v596_v51, %v595_v50  ;;  %v597_v53 = vld [vmem:[#allocation15 + $0x40] sm:$0xff]  ;;  %v598_v54 = vld [vmem:[#allocation15 + $0x48] sm:$0xff] }
 0x3a9   :  { %v564_v63 = vmul.f32 %v560_v36, %v556_v57  ;;  %v2602_v55 = vpack.c.bf16 %v598_v54, %v597_v53  ;;  %v600_v57 = vld [vmem:[#allocation15 + $0x58] sm:$0xff] }
 0x3aa   :  { %v563_v5 = vmul.f32 %v560_v36, %v555_v60  ;;  %v606_v2 = vpack.c.bf16 %v3536_v59, %v3538_v61  ;;  %v2606_v58 = vpack.c.bf16 %v600_v57, %v599_v56  ;;  %v601_v60 = vld [vmem:[#allocation15 + $0x60] sm:$0xff] }
 0x3ab   :  { %v3542_v6 = vadd.f32 %v568_v0, %v564_v63  ;;  %v602_v63 = vld [vmem:[#allocation15 + $0x68] sm:$0xff] }
 0x3ac   :  { %611 = vmatpush1.bf16.msra.mxu1 %v606_v2  ;;  %v3544_v7 = vadd.f32 %v568_v0, %v563_v5  ;;  %v594_v0 = vld [vmem:[#allocation15 + $0x28] sm:$0xff]  ;;  %v2610_v5 = vpack.c.bf16 %v602_v63, %v601_v60  ;;  %v603_v2 = vld [vmem:[#allocation15 + $0x70] sm:$0xff] }
 0x3ad   :  { %2016 = vmatprep.subr.msk.bf16.mxu1 %vm3505_vm11, %v3186_v38  ;;  %v2594_v49 = vpack.c.bf16 %v594_v0, %v593_v48 }
 0x3ae   :  { %v607_v8 = vpack.c.bf16 %v3542_v6, %v3544_v7 }
 0x3b0   :  { %613 = vmatpush1.bf16.msra.mxu1 %v607_v8  ;;  %v604_v8 = vld [vmem:[#allocation15 + $0x78] sm:$0xff] }
 0x3b1   :  { %v2614_v13 = vpack.c.bf16 %v604_v8, %v603_v2 }
 0x3b3   :  { %2017 = vmatmul.mubr.msk.bf16.vlgmr.msra.gmra.mrb[8].mxu1 %vm261_vm4, %v3444_v12 }
 0x3b4   :  { %652 = vmatprep.mubr.bf16.mxu1 %v3184_v30 }
 0x3bb   :  { %2018 = vmatmul.mubr.msk.bf16.gmra.mrb[12].mxu1 %vm261_vm4, %v3466_v29 }
 0x486   :  { %v644_v18 = vpop.f32.mrb[8].mxu1 }
 0x487   :  { %v646_v40 = vpop.f32.mrb[9].mxu1  ;;  %v663_v19 = vadd.f32 %v644_v18, %v3538_v61 }
 0x488   :  { %v885_v20 = vadd.f32 %v3492_v11, %v646_v40  ;;  %v648_v22 = vpop.f32.mrb[10].mxu1 }
 0x489   :  { %v664_v23 = vadd.f32 %v648_v22, %v3536_v59  ;;  %v650_v24 = vpop.f32.mrb[11].mxu1  ;;  %2288 = vmatprep.mubr.f32.mxu0 %v663_v19 }
 0x48a   :  { %vm889_vm0 = vcmp.gt.f32.partialorder %v885_v20, 0.0  ;;  %v886_v25 = vadd.f32 %v3489_v35, %v650_v24 }
 0x48b   :  { %2289 = vmatmul.mubr.f32.vlgmr.msra.gmra.mrb[0].mxu0 %v664_v23  ;;  %v3561_v26 = vsel %vm889_vm0, 1.0, %v3182_v9 }
 0x48c   :  { %vm890_vm1 = vcmp.gt.f32.partialorder %v886_v25, 0.0 }
 0x48d   :  { %v3564_v27 = vsel %vm890_vm1, 1.0, %v3182_v9  ;;  %vm2023_vm2 = vmpackc.low %vm890_vm1, %vm889_vm0 }
 0x48e   :  { %v2822_v11 = vpack.i.bf16 %v3564_v27, %v3561_v26  ;;  %v654_v28 = vpop.f32.mrb[12].mxu1  ;;  %2024 = vmatprep.subr.msk.bf16.mxu0 %vm2023_vm2, %v3186_v38 }
 0x48f   :  { %v665_v31 = vadd.f32 %v654_v28, %v3544_v7  ;;  %v656_v32 = vpop.f32.mrb[13].mxu1 }
 0x490   :  { %v887_v35 = vadd.f32 %v3503_v39, %v656_v32  ;;  %2823 = vperm.xlu1 %2811, %v2822_v11   ;;  %v658_v34 = vpop.f32.mrb[14].mxu1  ;;  %v947_v39 = vld [vmem:[#allocation14 + $0xa8] sm:$0xff] }
 0x491   :  { %v666_v36 = vadd.f32 %v658_v34, %v3542_v6  ;;  %v660_v37 = vpop.f32.mrb[15].mxu1  ;;  %2291 = vmatprep.mubr.f32.mxu0 %v665_v31 }
 0x492   :  { %vm891_vm3 = vcmp.gt.f32.partialorder %v887_v35, 0.0  ;;  %v888_v15 = vadd.f32 %v3500_v10, %v660_v37  ;;  %v590_v10 = vld [vmem:[#allocation15 + $0x8] sm:$0xff]  ;;  %v763_v35 = vrot.slane %v605_v16, %v3512_v62  ;;  %v856_v37 = vrot.slane %v605_v16, %v3517_v3 }
 0x493   :  { %2292 = vmatmul.mubr.f32.gmra.mrb[2].mxu0 %v666_v36  ;;  %v3575_v41 = vsel %vm891_vm3, 1.0, %v3182_v9  ;;  %v2586_v45 = vpack.c.bf16 %v590_v10, %v589_v43  ;;  %v864_v10 = vrot.slane %v605_v16, %v3520_v4 }
 0x494   :  { %vm892_vm6 = vcmp.gt.f32.partialorder %v888_v15, 0.0  ;;  %1013 = vmatprep.mubr.bf16.mxu0 %v3184_v30 }
 0x495   :  { %v3578_v14 = vsel %vm892_vm6, 1.0, %v3182_v9  ;;  %vm3580_vm7 = vmpackc.low %vm892_vm6, %vm891_vm3  ;;  %2587 = vmatprep.subr.bf16.mxu1 %v2586_v45 }
 0x496   :  { %v2827_v42 = vpack.i.bf16 %v3578_v14, %v3575_v41  ;;  %2589 = vmatpush3.bf16.msra.mxu1 %v2586_v45 }
 0x497   :  { %2591 = vmatprep.subr.bf16.mxu1 %v2590_v47 }
 0x498   :  { %2828 = vperm.xlu0 %2810, %v2827_v42  }
 0x49a   :  { %2593 = vmatpush3.bf16.msra.mxu1 %v2590_v47 }
 0x49b   :  { %2595 = vmatprep.subr.bf16.mxu1 %v2594_v49 }
 0x49e   :  { %2597 = vmatpush3.bf16.msra.mxu1 %v2594_v49 }
 0x49f   :  { %2599 = vmatprep.subr.bf16.mxu1 %v2598_v52 }
 0x4a2   :  { %2601 = vmatpush3.bf16.msra.mxu1 %v2598_v52 }
 0x4a3   :  { %2603 = vmatprep.subr.bf16.mxu1 %v2602_v55 }
 0x4a6   :  { %2605 = vmatpush3.bf16.msra.mxu1 %v2602_v55 }
 0x4a7   :  { %2607 = vmatprep.subr.bf16.mxu1 %v2606_v58 }
 0x4aa   :  { %2609 = vmatpush3.bf16.msra.mxu1 %v2606_v58 }
 0x4ab   :  { %2611 = vmatprep.subr.bf16.mxu1 %v2610_v5 }
 0x4ae   :  { %2613 = vmatpush3.bf16.msra.mxu1 %v2610_v5  ;;  %v928_v5 = vrot.slane %v605_v16, %v3527_v21 }
 0x4af   :  { %2615 = vmatprep.subr.bf16.mxu1 %v2614_v13 }
 0x4b2   :  { %2617 = vmatpush3.bf16.msra.mxu1 %v2614_v13 }
 0x50f   :  { %v2824_v48 = vpop.permute.xlu1 %2823 }
 0x510   :  { %v2826_v55 = vunpack.i.h.bf16 %v2824_v48  ;;  %v2825_v2 = vunpack.i.l.bf16 %v2824_v48  ;;  %v944_v48 = vld [vmem:[#allocation14 + $0x90] sm:$0xff] }
 0x55e   :  { %v2290_v18 = vpop.f32.mrb[0].mxu0 }
 0x55f   :  { %v743_v40 = vadd.f32 %v2290_v18, %v670_v17  ;;  %v737_v19 = vpop.f32.mrb[1].mxu0 }
 0x560   :  { %v738_v20 = vadd.f32 %v737_v19, %v670_v17 }
 0x561   :  { %v757_v23 = vmax.f32 %v743_v40, 0.0  ;;  %v936_v40 = vrot.slane %v605_v16, %v3530_v33 }
 0x562   :  { %v756_v22 = vmax.f32 %v738_v20, 0.0 }
 0x564   :  { %2326 = vmatprep.mubr.f32.mxu1 %v756_v22 }
 0x565   :  { %2327 = vmatmul.mubr.f32.vlgmr.msra.gmra.mrb[16].mxu1 %v757_v23 }
 0x566   :  { %v2293_v24 = vpop.f32.mrb[2].mxu0 }
 0x567   :  { %v753_v25 = vadd.f32 %v2293_v24, %v670_v17  ;;  %v747_v11 = vpop.f32.mrb[3].mxu0  ;;  %v2829_v24 = vpop.permute.xlu0 %2828 }
 0x568   :  { %v748_v28 = vadd.f32 %v747_v11, %v670_v17  ;;  %v2830_v16 = vunpack.i.l.bf16 %v2829_v24 }
 0x569   :  { %v759_v32 = vmax.f32 %v753_v25, 0.0 }
 0x56a   :  { %v758_v31 = vmax.f32 %v748_v28, 0.0 }
 0x56c   :  { %2329 = vmatprep.mubr.f32.mxu1 %v758_v31 }
 0x56d   :  { %2330 = vmatmul.mubr.f32.gmra.mrb[18].mxu1 %v759_v32 }
 0x638   :  { %v2328_v34 = vpop.f32.mrb[16].mxu1 }
 0x639   :  { %v836_v36 = vadd.f32 %v2328_v34, %v763_v35  ;;  %v830_v15 = vpop.f32.mrb[17].mxu1 }
 0x63a   :  { %v831_v42 = vadd.f32 %v830_v15, %v763_v35 }
 0x63b   :  { %v850_v43 = vmax.f32 %v836_v36, 0.0 }
 0x63c   :  { %v849_v44 = vmax.f32 %v831_v42, 0.0 }
 0x63d   :  { %v858_v45 = vmul.f32 %v856_v37, %v850_v43 }
 0x63e   :  { %v857_v46 = vmul.f32 %v856_v37, %v849_v44  ;;  %v942_v44 = vld [vmem:[#allocation14 + $0x80] sm:$0xff] }
 0x63f   :  { %v866_v47 = vadd.f32 %v864_v10, %v858_v45  ;;  %v943_v45 = vld [vmem:[#allocation14 + $0x88] sm:$0xff] }
 0x640   :  { %v865_v0 = vadd.f32 %v864_v10, %v857_v46  ;;  %v2331_v49 = vpop.f32.mrb[18].mxu1 }
 0x641   :  { %vm870_vm8 = vcmp.gt.f32.partialorder %v866_v47, 0.0  ;;  %v874_v50 = vmul.f32 0.01, %v866_v47  ;;  %v846_v51 = vadd.f32 %v2331_v49, %v763_v35  ;;  %v840_v52 = vpop.f32.mrb[19].mxu1 }
 0x642   :  { %vm869_vm9 = vcmp.gt.f32.partialorder %v865_v0, 0.0  ;;  %v873_v53 = vmul.f32 0.01, %v865_v0  ;;  %v841_v54 = vadd.f32 %v840_v52, %v763_v35  ;;  %v948_v52 = vld [vmem:[#allocation14 + $0xb0] sm:$0xff] }
 0x643   :  { %v878_v56 = vsel %vm870_vm8, %v866_v47, %v874_v50  ;;  %v852_v57 = vmax.f32 %v846_v51, 0.0  ;;  %v2618_v47 = vpack.c.bf16 %v943_v45, %v942_v44  ;;  %v946_v50 = vld [vmem:[#allocation14 + $0xa0] sm:$0xff]  ;;  %v962_v45 = vld [vmem:[#allocation15 + $0x98] sm:$0xff] }
 0x644   :  { %v882_v58 = vadd.f32 %v878_v56, %v3536_v59  ;;  %v877_v60 = vsel %vm869_vm9, %v865_v0, %v873_v53  ;;  %v851_v63 = vmax.f32 %v841_v54, 0.0  ;;  %v945_v0 = vld [vmem:[#allocation14 + $0x98] sm:$0xff]  ;;  %v2626_v51 = vpack.c.bf16 %v947_v39, %v946_v50  ;;  %v951_v56 = vld [vmem:[#allocation14 + $0xc8] sm:$0xff] }
 0x645   :  { %v881_v8 = vadd.f32 %v877_v60, %v3538_v61  ;;  %v860_v13 = vmul.f32 %v856_v37, %v852_v57  ;;  %v2831_v61 = vunpack.i.h.bf16 %v2829_v24  ;;  %v2622_v49 = vpack.c.bf16 %v945_v0, %v944_v48  ;;  %v949_v53 = vld [vmem:[#allocation14 + $0xb8] sm:$0xff]  ;;  %v964_v48 = vld [vmem:[#allocation15 + $0xa8] sm:$0xff] }
 0x646   :  { %v922_v17 = vmul.f32 %v2826_v55, %v882_v58  ;;  %v859_v18 = vmul.f32 %v856_v37, %v851_v63  ;;  %v2630_v54 = vpack.c.bf16 %v949_v53, %v948_v52  ;;  %v950_v55 = vld [vmem:[#allocation14 + $0xc0] sm:$0xff]  ;;  %v952_v58 = vld [vmem:[#allocation14 + $0xd0] sm:$0xff]  ;;  %v966_v50 = vld [vmem:[#allocation15 + $0xb8] sm:$0xff] }
 0x647   :  { %v921_v19 = vmul.f32 %v2825_v2, %v881_v8  ;;  %v868_v20 = vadd.f32 %v864_v10, %v860_v13  ;;  %v2634_v57 = vpack.c.bf16 %v951_v56, %v950_v55  ;;  %v954_v63 = vld [vmem:[#allocation14 + $0xe0] sm:$0xff]  ;;  %v956_v8 = vld [vmem:[#allocation14 + $0xf0] sm:$0xff]  ;;  %v957_v13 = vld [vmem:[#allocation14 + $0xf8] sm:$0xff] }
 0x648   :  { %v867_v22 = vadd.f32 %v864_v10, %v859_v18  ;;  %v930_v23 = vmul.f32 %v928_v5, %v922_v17  ;;  %v2646_v17 = vpack.c.bf16 %v957_v13, %v956_v8  ;;  %v968_v52 = vld [vmem:[#allocation15 + $0xc8] sm:$0xff]  ;;  %v970_v55 = vld [vmem:[#allocation15 + $0xd8] sm:$0xff] }
 0x649   :  { %vm872_vm10 = vcmp.gt.f32.partialorder %v868_v20, 0.0  ;;  %v876_v25 = vmul.f32 0.01, %v868_v20  ;;  %v929_v59 = vmul.f32 %v928_v5, %v921_v19 }
 0x64a   :  { %vm871_vm11 = vcmp.gt.f32.partialorder %v867_v22, 0.0  ;;  %v875_v11 = vmul.f32 0.01, %v867_v22  ;;  %v3594_v28 = vadd.f32 %v936_v40, %v930_v23 }
 0x64b   :  { %v880_v31 = vsel %vm872_vm10, %v868_v20, %v876_v25  ;;  %v3596_v32 = vadd.f32 %v936_v40, %v929_v59 }
 0x64c   :  { %v884_v35 = vadd.f32 %v880_v31, %v3542_v6  ;;  %v879_v34 = vsel %vm871_vm11, %v867_v22, %v875_v11 }
 0x64d   :  { %v883_v36 = vadd.f32 %v879_v34, %v3544_v7  ;;  %v977_v37 = vpack.c.bf16 %v3594_v28, %v3596_v32 }
 0x64e   :  { %v924_v15 = vmul.f32 %v2831_v61, %v884_v35 }
 0x64f   :  { %v923_v42 = vmul.f32 %v2830_v16, %v883_v36  ;;  %982 = vmatpush1.bf16.msra.mxu0 %v977_v37 }
 0x650   :  { %2026 = vmatprep.subr.msk.bf16.mxu0 %vm3580_vm7, %v3186_v38  ;;  %v932_v43 = vmul.f32 %v928_v5, %v924_v15 }
 0x651   :  { %v931_v10 = vmul.f32 %v928_v5, %v923_v42  ;;  %v955_v5 = vld [vmem:[#allocation14 + $0xe8] sm:$0xff] }
 0x652   :  { %v3605_v46 = vadd.f32 %v936_v40, %v932_v43  ;;  %v2642_v2 = vpack.c.bf16 %v955_v5, %v954_v63  ;;  %v959_v43 = vld [vmem:[#allocation15 + $0x80] sm:$0xff]  ;;  %v974_v63 = vld [vmem:[#allocation15 + $0xf8] sm:$0xff] }
 0x653   :  { %v3607_v6 = vadd.f32 %v936_v40, %v931_v10  ;;  %v961_v10 = vld [vmem:[#allocation15 + $0x90] sm:$0xff] }
 0x655   :  { %v978_v7 = vpack.c.bf16 %v3605_v46, %v3607_v6 }
 0x657   :  { %984 = vmatpush1.bf16.msra.mxu0 %v978_v7  ;;  %v963_v7 = vld [vmem:[#allocation15 + $0xa0] sm:$0xff] }
 0x658   :  { %2619 = vmatprep.subr.bf16.mxu0 %v2618_v47  ;;  %v2658_v0 = vpack.c.bf16 %v964_v48, %v963_v7 }
 0x65a   :  { %2027 = vmatmul.mubr.msk.bf16.vlgmr.msra.gmra.mrb[4].mxu0 %vm261_vm4, %v3444_v12  ;;  %v953_v12 = vld [vmem:[#allocation14 + $0xd8] sm:$0xff] }
 0x65b   :  { %1023 = vmatprep.mubr.bf16.mxu0 %v3184_v30  ;;  %2621 = vmatpush3.bf16.msra.mxu0 %v2618_v47  ;;  %v2638_v60 = vpack.c.bf16 %v953_v12, %v952_v58  ;;  %v2654_v47 = vpack.c.bf16 %v962_v45, %v961_v10  ;;  %v972_v58 = vld [vmem:[#allocation15 + $0xe8] sm:$0xff] }
 0x65c   :  { %2623 = vmatprep.subr.bf16.mxu0 %v2622_v49 }
 0x65f   :  { %2625 = vmatpush3.bf16.msra.mxu0 %v2622_v49  ;;  %v965_v49 = vld [vmem:[#allocation15 + $0xb0] sm:$0xff] }
 0x660   :  { %2627 = vmatprep.subr.bf16.mxu0 %v2626_v51  ;;  %v2662_v39 = vpack.c.bf16 %v966_v50, %v965_v49 }
 0x662   :  { %2028 = vmatmul.mubr.msk.bf16.gmra.mrb[8].mxu0 %vm261_vm4, %v3466_v29 }
 0x663   :  { %2629 = vmatpush3.bf16.msra.mxu0 %v2626_v51  ;;  %v967_v51 = vld [vmem:[#allocation15 + $0xc0] sm:$0xff] }
 0x664   :  { %2631 = vmatprep.subr.bf16.mxu0 %v2630_v54  ;;  %v2666_v53 = vpack.c.bf16 %v968_v52, %v967_v51 }
 0x667   :  { %2633 = vmatpush3.bf16.msra.mxu0 %v2630_v54  ;;  %v969_v54 = vld [vmem:[#allocation15 + $0xd0] sm:$0xff] }
 0x668   :  { %2635 = vmatprep.subr.bf16.mxu0 %v2634_v57  ;;  %v2670_v56 = vpack.c.bf16 %v970_v55, %v969_v54 }
 0x66b   :  { %2637 = vmatpush3.bf16.msra.mxu0 %v2634_v57  ;;  %v971_v57 = vld [vmem:[#allocation15 + $0xe0] sm:$0xff] }
 0x66c   :  { %2639 = vmatprep.subr.bf16.mxu0 %v2638_v60  ;;  %v2674_v12 = vpack.c.bf16 %v972_v58, %v971_v57 }
 0x66f   :  { %2641 = vmatpush3.bf16.msra.mxu0 %v2638_v60  ;;  %v973_v60 = vld [vmem:[#allocation15 + $0xf0] sm:$0xff] }
 0x670   :  { %2643 = vmatprep.subr.bf16.mxu0 %v2642_v2  ;;  %v2678_v5 = vpack.c.bf16 %v974_v63, %v973_v60 }
 0x673   :  { %2645 = vmatpush3.bf16.msra.mxu0 %v2642_v2  ;;  %v976_v2 = vld [vmem:[#allocation17 + $0x8] sm:$0x3f] }
 0x674   :  { %2647 = vmatprep.subr.bf16.mxu0 %v2646_v17  ;;  %v1041_v8 = vrot.slane %v976_v2, %v3479_v1  ;;  %v1299_v57 = vrot.slane %v976_v2, %v3527_v21 }
 0x677   :  { %2649 = vmatpush3.bf16.msra.mxu0 %v2646_v17 }
 0x72d   :  { %v1015_v29 = vpop.f32.mrb[4].mxu0 }
 0x72e   :  { %v1034_v18 = vadd.f32 %v1015_v29, %v3596_v32  ;;  %v1017_v40 = vpop.f32.mrb[5].mxu0 }
 0x72f   :  { %v1256_v19 = vadd.f32 %v3561_v26, %v1017_v40  ;;  %v1019_v20 = vpop.f32.mrb[6].mxu0 }
 0x730   :  { %v1035_v22 = vadd.f32 %v1019_v20, %v3594_v28  ;;  %v1021_v23 = vpop.f32.mrb[7].mxu0  ;;  %2364 = vmatprep.mubr.f32.mxu0 %v1034_v18 }
 0x731   :  { %vm1260_vm12 = vcmp.gt.f32.partialorder %v1256_v19, 0.0  ;;  %v1257_v24 = vadd.f32 %v3564_v27, %v1021_v23 }
 0x732   :  { %2365 = vmatmul.mubr.f32.vlgmr.msra.gmra.mrb[12].mxu0 %v1035_v22  ;;  %v3621_v25 = vsel %vm1260_vm12, 1.0, %v3182_v9 }
 0x733   :  { %vm1261_vm13 = vcmp.gt.f32.partialorder %v1257_v24, 0.0 }
 0x734   :  { %v3624_v59 = vsel %vm1261_vm13, 1.0, %v3182_v9  ;;  %vm2033_vm14 = vmpackc.low %vm1261_vm13, %vm1260_vm12 }
 0x735   :  { %v2832_v26 = vpack.i.bf16 %v3624_v59, %v3621_v25  ;;  %v1025_v11 = vpop.f32.mrb[8].mxu0  ;;  %2034 = vmatprep.subr.msk.bf16.mxu0 %vm2033_vm14, %v3186_v38 }
 0x736   :  { %v1036_v31 = vadd.f32 %v1025_v11, %v3607_v6  ;;  %v1027_v61 = vpop.f32.mrb[9].mxu0 }
 0x737   :  { %v1258_v27 = vadd.f32 %v3575_v41, %v1027_v61  ;;  %2833 = vperm.xlu1 %2811, %v2832_v26   ;;  %v1029_v35 = vpop.f32.mrb[10].mxu0  ;;  %v1318_v41 = vld [vmem:[#allocation14 + $0x128] sm:$0xff] }
 0x738   :  { %v1037_v34 = vadd.f32 %v1029_v35, %v3605_v46  ;;  %v1031_v16 = vpop.f32.mrb[11].mxu0  ;;  %2367 = vmatprep.mubr.f32.mxu0 %v1036_v31  ;;  %v1134_v31 = vrot.slane %v976_v2, %v3512_v62  ;;  %v1227_v35 = vrot.slane %v976_v2, %v3517_v3 }
 0x739   :  { %vm1262_vm15 = vcmp.gt.f32.partialorder %v1258_v27, 0.0  ;;  %v1259_v36 = vadd.f32 %v3578_v14, %v1031_v16  ;;  %v960_v14 = vld [vmem:[#allocation15 + $0x88] sm:$0xff] }
 0x73a   :  { %2368 = vmatmul.mubr.f32.gmra.mrb[14].mxu0 %v1037_v34  ;;  %v3635_v37 = vsel %vm1262_vm15, 1.0, %v3182_v9  ;;  %v2650_v44 = vpack.c.bf16 %v960_v14, %v959_v43 }
 0x73b   :  { %vm1263_vm0 = vcmp.gt.f32.partialorder %v1259_v36, 0.0  ;;  %1384 = vmatprep.mubr.bf16.mxu0 %v3184_v30 }
 0x73c   :  { %v3638_v15 = vsel %vm1263_vm0, 1.0, %v3182_v9  ;;  %vm3640_vm1 = vmpackc.low %vm1263_vm0, %vm1262_vm15  ;;  %2651 = vmatprep.subr.bf16.mxu1 %v2650_v44 }
 0x73d   :  { %v2837_v42 = vpack.i.bf16 %v3638_v15, %v3635_v37  ;;  %2653 = vmatpush3.bf16.msra.mxu1 %v2650_v44 }
 0x73e   :  { %2655 = vmatprep.subr.bf16.mxu1 %v2654_v47 }
 0x73f   :  { %2838 = vperm.xlu0 %2810, %v2837_v42   ;;  %v1235_v42 = vrot.slane %v976_v2, %v3520_v4 }
 0x741   :  { %2657 = vmatpush3.bf16.msra.mxu1 %v2654_v47 }
 0x742   :  { %2659 = vmatprep.subr.bf16.mxu1 %v2658_v0 }
 0x745   :  { %2661 = vmatpush3.bf16.msra.mxu1 %v2658_v0 }
 0x746   :  { %2663 = vmatprep.subr.bf16.mxu1 %v2662_v39 }
 0x749   :  { %2665 = vmatpush3.bf16.msra.mxu1 %v2662_v39 }
 0x74a   :  { %2667 = vmatprep.subr.bf16.mxu1 %v2666_v53 }
 0x74d   :  { %2669 = vmatpush3.bf16.msra.mxu1 %v2666_v53 }
 0x74e   :  { %2671 = vmatprep.subr.bf16.mxu1 %v2670_v56 }
 0x751   :  { %2673 = vmatpush3.bf16.msra.mxu1 %v2670_v56 }
 0x752   :  { %2675 = vmatprep.subr.bf16.mxu1 %v2674_v12 }
 0x755   :  { %2677 = vmatpush3.bf16.msra.mxu1 %v2674_v12 }
 0x756   :  { %2679 = vmatprep.subr.bf16.mxu1 %v2678_v5 }
 0x759   :  { %2681 = vmatpush3.bf16.msra.mxu1 %v2678_v5 }
 0x7b6   :  { %v2834_v45 = vpop.permute.xlu1 %2833 }
 0x7b7   :  { %v2836_v51 = vunpack.i.h.bf16 %v2834_v45  ;;  %v2835_v58 = vunpack.i.l.bf16 %v2834_v45 }
 0x805   :  { %v2366_v13 = vpop.f32.mrb[12].mxu0 }
 0x806   :  { %v1114_v17 = vadd.f32 %v2366_v13, %v1041_v8  ;;  %v1108_v29 = vpop.f32.mrb[13].mxu0 }
 0x807   :  { %v1109_v18 = vadd.f32 %v1108_v29, %v1041_v8 }
 0x808   :  { %v1128_v19 = vmax.f32 %v1114_v17, 0.0 }
 0x809   :  { %v1127_v40 = vmax.f32 %v1109_v18, 0.0 }
 0x80b   :  { %2402 = vmatprep.mubr.f32.mxu1 %v1127_v40  ;;  %v2839_v40 = vpop.permute.xlu0 %2838 }
 0x80c   :  { %2403 = vmatmul.mubr.f32.vlgmr.msra.gmra.mrb[20].mxu1 %v1128_v19 }
 0x80d   :  { %v2369_v20 = vpop.f32.mrb[14].mxu0 }
 0x80e   :  { %v1124_v22 = vadd.f32 %v2369_v20, %v1041_v8  ;;  %v1118_v23 = vpop.f32.mrb[15].mxu0 }
 0x80f   :  { %v1119_v24 = vadd.f32 %v1118_v23, %v1041_v8  ;;  %v1307_v8 = vrot.slane %v976_v2, %v3530_v33  ;;  %v2840_v2 = vunpack.i.l.bf16 %v2839_v40 }
 0x810   :  { %v1130_v11 = vmax.f32 %v1124_v22, 0.0 }
 0x811   :  { %v1129_v26 = vmax.f32 %v1119_v24, 0.0 }
 0x813   :  { %2405 = vmatprep.mubr.f32.mxu1 %v1129_v26 }
 0x814   :  { %2406 = vmatmul.mubr.f32.gmra.mrb[22].mxu1 %v1130_v11 }
 0x8df   :  { %v2404_v61 = vpop.f32.mrb[20].mxu1 }
 0x8e0   :  { %v1207_v27 = vadd.f32 %v2404_v61, %v1134_v31  ;;  %v1201_v34 = vpop.f32.mrb[21].mxu1 }
 0x8e1   :  { %v1202_v16 = vadd.f32 %v1201_v34, %v1134_v31 }
 0x8e2   :  { %v1221_v36 = vmax.f32 %v1207_v27, 0.0 }
 0x8e3   :  { %v1220_v43 = vmax.f32 %v1202_v16, 0.0 }
 0x8e4   :  { %v1229_v14 = vmul.f32 %v1227_v35, %v1221_v36  ;;  %v1313_v36 = vld [vmem:[#allocation14 + $0x100] sm:$0xff] }
 0x8e5   :  { %v1228_v10 = vmul.f32 %v1227_v35, %v1220_v43 }
 0x8e6   :  { %v1237_v44 = vadd.f32 %v1235_v42, %v1229_v14 }
 0x8e7   :  { %v1236_v47 = vadd.f32 %v1235_v42, %v1228_v10  ;;  %v2407_v7 = vpop.f32.mrb[22].mxu1  ;;  %v1315_v10 = vld [vmem:[#allocation14 + $0x110] sm:$0xff] }
 0x8e8   :  { %vm1241_vm2 = vcmp.gt.f32.partialorder %v1237_v44, 0.0  ;;  %v1245_v48 = vmul.f32 0.01, %v1237_v44  ;;  %v1217_v0 = vadd.f32 %v2407_v7, %v1134_v31  ;;  %v1211_v49 = vpop.f32.mrb[23].mxu1 }
 0x8e9   :  { %vm1240_vm3 = vcmp.gt.f32.partialorder %v1236_v47, 0.0  ;;  %v1244_v50 = vmul.f32 0.01, %v1236_v47  ;;  %v1212_v39 = vadd.f32 %v1211_v49, %v1134_v31 }
 0x8ea   :  { %v1249_v52 = vsel %vm1241_vm2, %v1237_v44, %v1245_v48  ;;  %v1223_v53 = vmax.f32 %v1217_v0, 0.0  ;;  %v1316_v44 = vld [vmem:[#allocation14 + $0x118] sm:$0xff]  ;;  %v1319_v48 = vld [vmem:[#allocation14 + $0x130] sm:$0xff] }
 0x8eb   :  { %v1253_v54 = vadd.f32 %v1249_v52, %v3594_v28  ;;  %v1248_v55 = vsel %vm1240_vm3, %v1236_v47, %v1244_v50  ;;  %v1222_v56 = vmax.f32 %v1212_v39, 0.0  ;;  %v2686_v45 = vpack.c.bf16 %v1316_v44, %v1315_v10  ;;  %v1317_v47 = vld [vmem:[#allocation14 + $0x120] sm:$0xff]  ;;  %v1320_v0 = vld [vmem:[#allocation14 + $0x138] sm:$0xff]  ;;  %v1322_v39 = vld [vmem:[#allocation14 + $0x148] sm:$0xff] }
 0x8ec   :  { %v1252_v12 = vadd.f32 %v1248_v55, %v3596_v32  ;;  %v1231_v60 = vmul.f32 %v1227_v35, %v1223_v53  ;;  %v2841_v32 = vunpack.i.h.bf16 %v2839_v40  ;;  %v2690_v7 = vpack.c.bf16 %v1318_v41, %v1317_v47  ;;  %v1321_v50 = vld [vmem:[#allocation14 + $0x140] sm:$0xff]  ;;  %v1323_v53 = vld [vmem:[#allocation14 + $0x150] sm:$0xff]  ;;  %v1339_v41 = vld [vmem:[#allocation15 + $0x148] sm:$0xff] }
 0x8ed   :  { %v1293_v63 = vmul.f32 %v2836_v51, %v1253_v54  ;;  %v1230_v5 = vmul.f32 %v1227_v35, %v1222_v56  ;;  %v2694_v49 = vpack.c.bf16 %v1320_v0, %v1319_v48  ;;  %v2863_v51 = vld [vmem:[#allocation6 + $0x8] sm:$0xff]   ;;  %v2698_v52 = vpack.c.bf16 %v1322_v39, %v1321_v50  ;;  %v1324_v54 = vld [vmem:[#allocation14 + $0x158] sm:$0xff]  ;;  %v1325_v55 = vld [vmem:[#allocation14 + $0x160] sm:$0xff] }
 0x8ee   :  { %v1292_v13 = vmul.f32 %v2835_v58, %v1252_v12  ;;  %v1239_v17 = vadd.f32 %v1235_v42, %v1231_v60  ;;  %v1326_v56 = vld [vmem:[#allocation14 + $0x168] sm:$0xff]  ;;  %v1327_v58 = vld [vmem:[#allocation14 + $0x170] sm:$0xff]  ;;  %v1328_v12 = vld [vmem:[#allocation14 + $0x178] sm:$0xff] }
 0x8ef   :  { %v1238_v29 = vadd.f32 %v1235_v42, %v1230_v5  ;;  %v1301_v18 = vmul.f32 %v1299_v57, %v1293_v63  ;;  %v1314_v42 = vld [vmem:[#allocation14 + $0x108] sm:$0xff]  ;;  %v2710_v60 = vpack.c.bf16 %v1328_v12, %v1327_v58  ;;  %v1336_v44 = vld [vmem:[#allocation15 + $0x130] sm:$0xff]  ;;  %v1338_v47 = vld [vmem:[#allocation15 + $0x140] sm:$0xff] }
 0x8f0   :  { %vm1243_vm6 = vcmp.gt.f32.partialorder %v1239_v17, 0.0  ;;  %v1247_v19 = vmul.f32 0.01, %v1239_v17  ;;  %v1300_v28 = vmul.f32 %v1299_v57, %v1292_v13  ;;  %v2682_v14 = vpack.c.bf16 %v1314_v42, %v1313_v36  ;;  %v1333_v42 = vld [vmem:[#allocation15 + $0x118] sm:$0xff]  ;;  %v1343_v50 = vld [vmem:[#allocation15 + $0x168] sm:$0xff] }
 0x8f1   :  { %vm1242_vm7 = vcmp.gt.f32.partialorder %v1238_v29, 0.0  ;;  %v1246_v20 = vmul.f32 0.01, %v1238_v29  ;;  %v3654_v22 = vadd.f32 %v1307_v8, %v1301_v18  ;;  %v1341_v48 = vld [vmem:[#allocation15 + $0x158] sm:$0xff] }
 0x8f2   :  { %v1251_v23 = vsel %vm1243_vm6, %v1239_v17, %v1247_v19  ;;  %v3656_v24 = vadd.f32 %v1307_v8, %v1300_v28  ;;  %v1687_v12 = vld [vmem:[#allocation18 + $0x20] sm:$0xff] }
 0x8f3   :  { %v1255_v26 = vadd.f32 %v1251_v23, %v3605_v46  ;;  %v1250_v11 = vsel %vm1242_vm7, %v1238_v29, %v1246_v20 }
 0x8f4   :  { %v1254_v31 = vadd.f32 %v1250_v11, %v3607_v6  ;;  %v1348_v61 = vpack.c.bf16 %v3654_v22, %v3656_v24 }
 0x8f5   :  { %v1295_v27 = vmul.f32 %v2841_v32, %v1255_v26 }
 0x8f6   :  { %v1294_v35 = vmul.f32 %v2840_v2, %v1254_v31  ;;  %1353 = vmatpush1.bf16.msra.mxu0 %v1348_v61 }
 0x8f7   :  { %2036 = vmatprep.subr.msk.bf16.mxu0 %vm3640_vm1, %v3186_v38  ;;  %v1303_v34 = vmul.f32 %v1299_v57, %v1295_v27  ;;  %v2862_v38 = vld [vmem:[#allocation6] sm:$0xff]   ;;  %vm1818_vm1 = vcmask 130048  }
 0x8f8   :  { %v1302_v16 = vmul.f32 %v1299_v57, %v1294_v35  ;;  %v2706_v57 = vpack.c.bf16 %v1326_v56, %v1325_v55  ;;  %v1330_v35 = vld [vmem:[#allocation15 + $0x100] sm:$0xff]  ;;  %v1685_v55 = vld [vmem:[#allocation18 + $0x10] sm:$0xff] }
 0x8f9   :  { %v3665_v43 = vadd.f32 %v1307_v8, %v1303_v34  ;;  %v1331_v34 = vld [vmem:[#allocation15 + $0x108] sm:$0xff] }
 0x8fa   :  { %v3667_v46 = vadd.f32 %v1307_v8, %v1302_v16  ;;  %v1332_v16 = vld [vmem:[#allocation15 + $0x110] sm:$0xff]  ;;  %v2714_v36 = vpack.c.bf16 %v1331_v34, %v1330_v35  ;;  %v1692_v35 = vld [vmem:[#allocation18 + $0x48] sm:$0xff] }
 0x8fc   :  { %v1349_v6 = vpack.c.bf16 %v3665_v43, %v3667_v46  ;;  %2715 = vmatprep.subr.bf16.mxu1 %v2714_v36 }
 0x8fd   :  { %2717 = vmatpush3.bf16.msra.mxu1 %v2714_v36  ;;  %v1694_v36 = vld [vmem:[#allocation18 + $0x58] sm:$0xff] }
 0x8fe   :  { %1355 = vmatpush1.bf16.msra.mxu0 %v1349_v6  ;;  %v1334_v6 = vld [vmem:[#allocation15 + $0x120] sm:$0xff] }
 0x8ff   :  { %2683 = vmatprep.subr.bf16.mxu0 %v2682_v14 }
 0x901   :  { %2037 = vmatmul.mubr.msk.bf16.vlgmr.msra.gmra.mrb[16].mxu0 %vm261_vm4, %v2862_v38  ;;  %v2730_v38 = vpack.c.bf16 %v1339_v41, %v1338_v47 }
 0x902   :  { %1394 = vmatprep.mubr.bf16.mxu0 %v3184_v30  ;;  %2685 = vmatpush3.bf16.msra.mxu0 %v2682_v14  ;;  %v2702_v30 = vpack.c.bf16 %v1324_v54, %v1323_v53  ;;  %v2718_v14 = vpack.c.bf16 %v1333_v42, %v1332_v16  ;;  %v1683_v54 = vld [vmem:[#allocation18] sm:$0xff]  ;;  %v1693_v16 = vld [vmem:[#allocation18 + $0x50] sm:$0xff] }
 0x903   :  { %2687 = vmatprep.subr.bf16.mxu0 %v2686_v45  ;;  %v2766_v42 = vpack.c.bf16 %v1694_v36, %v1693_v16 }
 0x904   :  { %2719 = vmatprep.subr.bf16.mxu1 %v2718_v14 }
 0x905   :  { %2721 = vmatpush3.bf16.msra.mxu1 %v2718_v14  ;;  %v1695_v14 = vld [vmem:[#allocation18 + $0x60] sm:$0xff] }
 0x906   :  { %2689 = vmatpush3.bf16.msra.mxu0 %v2686_v45  ;;  %v1337_v45 = vld [vmem:[#allocation15 + $0x138] sm:$0xff] }
 0x907   :  { %2691 = vmatprep.subr.bf16.mxu0 %v2690_v7 }
 0x909   :  { %2038 = vmatmul.mubr.msk.bf16.gmra.mrb[20].mxu0 %vm261_vm4, %v2863_v51  ;;  %v1344_v51 = vld [vmem:[#allocation15 + $0x170] sm:$0xff] }
 0x90a   :  { %2693 = vmatpush3.bf16.msra.mxu0 %v2690_v7  ;;  %v1340_v7 = vld [vmem:[#allocation15 + $0x150] sm:$0xff] }
 0x90b   :  { %2695 = vmatprep.subr.bf16.mxu0 %v2694_v49  ;;  %v2734_v0 = vpack.c.bf16 %v1341_v48, %v1340_v7 }
 0x90e   :  { %2697 = vmatpush3.bf16.msra.mxu0 %v2694_v49  ;;  %v1342_v49 = vld [vmem:[#allocation15 + $0x160] sm:$0xff] }
 0x90f   :  { %2699 = vmatprep.subr.bf16.mxu0 %v2698_v52  ;;  %v2738_v39 = vpack.c.bf16 %v1343_v50, %v1342_v49 }
 0x912   :  { %2701 = vmatpush3.bf16.msra.mxu0 %v2698_v52  ;;  %v1345_v52 = vld [vmem:[#allocation15 + $0x178] sm:$0xff] }
 0x913   :  { %2703 = vmatprep.subr.bf16.mxu0 %v2702_v30  ;;  %v2742_v53 = vpack.c.bf16 %v1345_v52, %v1344_v51 }
 0x916   :  { %2705 = vmatpush3.bf16.msra.mxu0 %v2702_v30  ;;  %v1684_v30 = vld [vmem:[#allocation18 + $0x8] sm:$0xff] }
 0x917   :  { %2707 = vmatprep.subr.bf16.mxu0 %v2706_v57  ;;  %v2746_v56 = vpack.c.bf16 %v1684_v30, %v1683_v54 }
 0x91a   :  { %2709 = vmatpush3.bf16.msra.mxu0 %v2706_v57  ;;  %v1686_v57 = vld [vmem:[#allocation18 + $0x18] sm:$0xff] }
 0x91b   :  { %2711 = vmatprep.subr.bf16.mxu0 %v2710_v60  ;;  %v2750_v58 = vpack.c.bf16 %v1686_v57, %v1685_v55 }
 0x91e   :  { %2713 = vmatpush3.bf16.msra.mxu0 %v2710_v60  ;;  %v1688_v60 = vld [vmem:[#allocation18 + $0x28] sm:$0xff] }
 0x91f   :  { %2747 = vmatprep.subr.bf16.mxu0 %v2746_v56 }
 0x9d4   :  { %v1386_v63 = vpop.f32.mrb[16].mxu0 }
 0x9d5   :  { %v1405_v5 = vadd.f32 %v1386_v63, %v3656_v24  ;;  %v1388_v8 = vpop.f32.mrb[17].mxu0  ;;  %v2754_v63 = vpack.c.bf16 %v1688_v60, %v1687_v12 }
 0x9d6   :  { %v1627_v13 = vadd.f32 %v3621_v25, %v1388_v8  ;;  %v1390_v17 = vpop.f32.mrb[18].mxu0 }
 0x9d7   :  { %v1406_v29 = vadd.f32 %v1390_v17, %v3654_v22  ;;  %v1392_v18 = vpop.f32.mrb[19].mxu0  ;;  %2440 = vmatprep.mubr.f32.mxu0 %v1405_v5  ;;  %v3698_v5 = vld [vmem:[#allocation17 + $0x10] sm:$0x3f] }
 0x9d8   :  { %vm1631_vm4 = vcmp.gt.f32.partialorder %v1627_v13, 0.0  ;;  %v1628_v40 = vadd.f32 %v3624_v59, %v1392_v18  ;;  %v1412_v8 = vrot.slane %v3698_v5, %v3479_v1  ;;  %v1691_v1 = vld [vmem:[#allocation18 + $0x40] sm:$0xff]  ;;  %v1606_v49 = vrot.slane %v3698_v5, %v3520_v4 }
 0x9d9   :  { %2441 = vmatmul.mubr.f32.vlgmr.msra.gmra.mrb[24].mxu0 %v1406_v29  ;;  %v3679_v19 = vsel %vm1631_vm4, 1.0, %v3182_v9  ;;  %v2762_v34 = vpack.c.bf16 %v1692_v35, %v1691_v1 }
 0x9da   :  { %vm1632_vm8 = vcmp.gt.f32.partialorder %v1628_v40, 0.0  ;;  %2749 = vmatpush3.bf16.msra.mxu0 %v2746_v56 }
 0x9db   :  { %v3682_v28 = vsel %vm1632_vm8, 1.0, %v3182_v9  ;;  %2751 = vmatprep.subr.bf16.mxu0 %v2750_v58 }
 0x9dc   :  { %v2842_v20 = vpack.i.bf16 %v3682_v28, %v3679_v19  ;;  %v1396_v25 = vpop.f32.mrb[20].mxu0 }
 0x9dd   :  { %v1407_v23 = vadd.f32 %v1396_v25, %v3667_v46  ;;  %v1398_v32 = vpop.f32.mrb[21].mxu0 }
 0x9de   :  { %v1629_v26 = vadd.f32 %v3635_v37, %v1398_v32  ;;  %2843 = vperm.xlu1 %2811, %v2842_v20   ;;  %v1400_v11 = vpop.f32.mrb[22].mxu0  ;;  %2753 = vmatpush3.bf16.msra.mxu0 %v2750_v58 }
 0x9df   :  { %v1408_v59 = vadd.f32 %v1400_v11, %v3665_v43  ;;  %v1402_v2 = vpop.f32.mrb[23].mxu0  ;;  %2443 = vmatprep.mubr.f32.mxu0 %v1407_v23  ;;  %2755 = vmatprep.subr.bf16.mxu0 %v2754_v63 }
 0x9e0   :  { %vm1633_vm9 = vcmp.gt.f32.partialorder %v1629_v26, 0.0  ;;  %v1630_v31 = vadd.f32 %v3638_v15, %v1402_v2  ;;  %v1335_v15 = vld [vmem:[#allocation15 + $0x128] sm:$0xff] }
 0x9e1   :  { %2444 = vmatmul.mubr.f32.gmra.mrb[26].mxu0 %v1408_v59  ;;  %v3691_v61 = vsel %vm1633_vm9, 1.0, %v3182_v9  ;;  %v2722_v10 = vpack.c.bf16 %v1335_v15, %v1334_v6  ;;  %v1689_v2 = vld [vmem:[#allocation18 + $0x30] sm:$0xff]  ;;  %v1696_v6 = vld [vmem:[#allocation18 + $0x68] sm:$0xff] }
 0x9e2   :  { %vm1634_vm10 = vcmp.gt.f32.partialorder %v1630_v31, 0.0  ;;  %2757 = vmatpush3.bf16.msra.mxu0 %v2754_v63  ;;  %v1690_v31 = vld [vmem:[#allocation18 + $0x38] sm:$0xff]  ;;  %v2770_v15 = vpack.c.bf16 %v1696_v6, %v1695_v14 }
 0x9e3   :  { %v3694_v27 = vsel %vm1634_vm10, 1.0, %v3182_v9  ;;  %2723 = vmatprep.subr.bf16.mxu1 %v2722_v10  ;;  %v2726_v9 = vpack.c.bf16 %v1337_v45, %v1336_v44  ;;  %v1698_v44 = vld [vmem:[#allocation18 + $0x78] sm:$0xff] }
 0x9e4   :  { %v2847_v37 = vpack.i.bf16 %v3694_v27, %v3691_v61  ;;  %2725 = vmatpush3.bf16.msra.mxu1 %v2722_v10  ;;  %v1697_v10 = vld [vmem:[#allocation18 + $0x70] sm:$0xff] }
 0x9e5   :  { %2727 = vmatprep.subr.bf16.mxu1 %v2726_v9  ;;  %v2774_v45 = vpack.c.bf16 %v1698_v44, %v1697_v10  ;;  %v2043_v10 = vld [vmem:[#allocation20] ss:$0 sm:$0xff] }
 0x9e6   :  { %2848 = vperm.xlu0 %2810, %v2847_v37   ;;  %v2758_v37 = vpack.c.bf16 %v1690_v31, %v1689_v2 }
 0x9e8   :  { %2729 = vmatpush3.bf16.msra.mxu1 %v2726_v9  ;;  %2759 = vmatprep.subr.bf16.mxu0 %v2758_v37  ;;  %v1505_v9 = vrot.slane %v3698_v5, %v3512_v62 }
 0x9e9   :  { %2731 = vmatprep.subr.bf16.mxu1 %v2730_v38  ;;  %2761 = vmatpush3.bf16.msra.mxu0 %v2758_v37 }
 0x9ea   :  { %2763 = vmatprep.subr.bf16.mxu0 %v2762_v34 }
 0x9ec   :  { %2733 = vmatpush3.bf16.msra.mxu1 %v2730_v38  ;;  %v1598_v38 = vrot.slane %v3698_v5, %v3517_v3 }
 0x9ed   :  { %2735 = vmatprep.subr.bf16.mxu1 %v2734_v0  ;;  %2765 = vmatpush3.bf16.msra.mxu0 %v2762_v34 }
 0x9ee   :  { %2767 = vmatprep.subr.bf16.mxu0 %v2766_v42 }
 0x9f0   :  { %2737 = vmatpush3.bf16.msra.mxu1 %v2734_v0 }
 0x9f1   :  { %2739 = vmatprep.subr.bf16.mxu1 %v2738_v39  ;;  %2769 = vmatpush3.bf16.msra.mxu0 %v2766_v42 }
 0x9f2   :  { %2771 = vmatprep.subr.bf16.mxu0 %v2770_v15 }
 0x9f4   :  { %2741 = vmatpush3.bf16.msra.mxu1 %v2738_v39 }
 0x9f5   :  { %2743 = vmatprep.subr.bf16.mxu1 %v2742_v53  ;;  %2773 = vmatpush3.bf16.msra.mxu0 %v2770_v15 }
 0x9f6   :  { %2775 = vmatprep.subr.bf16.mxu0 %v2774_v45 }
 0x9f8   :  { %2745 = vmatpush3.bf16.msra.mxu1 %v2742_v53 }
 0x9f9   :  { %2777 = vmatpush3.bf16.msra.mxu0 %v2774_v45 }
 0xa5d   :  { %v3708_v53 = vpop.permute.xlu1 %2843 }
 0xa5e   :  { %v2846_v58 = vunpack.i.h.bf16 %v3708_v53 }
 0xaac   :  { %v2442_v13 = vpop.f32.mrb[24].mxu0 }
 0xaad   :  { %v1485_v17 = vadd.f32 %v2442_v13, %v1412_v8  ;;  %v1479_v29 = vpop.f32.mrb[25].mxu0  ;;  %v1670_v13 = vrot.slane %v3698_v5, %v3527_v21 }
 0xaae   :  { %v1480_v18 = vadd.f32 %v1479_v29, %v1412_v8 }
 0xaaf   :  { %v1499_v20 = vmax.f32 %v1485_v17, 0.0  ;;  %v2845_v17 = vunpack.i.l.bf16 %v3708_v53 }
 0xab0   :  { %v1498_v40 = vmax.f32 %v1480_v18, 0.0 }
 0xab2   :  { %2478 = vmatprep.mubr.f32.mxu1 %v1498_v40 }
 0xab3   :  { %2479 = vmatmul.mubr.f32.vlgmr.msra.gmra.mrb[24].mxu1 %v1499_v20 }
 0xab4   :  { %v2445_v25 = vpop.f32.mrb[26].mxu0 }
 0xab5   :  { %v1495_v23 = vadd.f32 %v2445_v25, %v1412_v8  ;;  %v1489_v32 = vpop.f32.mrb[27].mxu0 }
 0xab6   :  { %v1490_v26 = vadd.f32 %v1489_v32, %v1412_v8  ;;  %v1678_v32 = vrot.slane %v3698_v5, %v3530_v33 }
 0xab7   :  { %v1501_v59 = vmax.f32 %v1495_v23, 0.0 }
 0xab8   :  { %v1500_v11 = vmax.f32 %v1490_v26, 0.0 }
 0xaba   :  { %2481 = vmatprep.mubr.f32.mxu1 %v1500_v11 }
 0xabb   :  { %2482 = vmatmul.mubr.f32.gmra.mrb[26].mxu1 %v1501_v59 }
 0xb86   :  { %v2480_v47 = vpop.f32.mrb[24].mxu1 }
 0xb87   :  { %v1578_v41 = vadd.f32 %v2480_v47, %v1505_v9  ;;  %v1572_v7 = vpop.f32.mrb[25].mxu1 }
 0xb88   :  { %v1573_v48 = vadd.f32 %v1572_v7, %v1505_v9 }
 0xb89   :  { %v1592_v0 = vmax.f32 %v1578_v41, 0.0 }
 0xb8a   :  { %v1591_v50 = vmax.f32 %v1573_v48, 0.0 }
 0xb8b   :  { %v1600_v39 = vmul.f32 %v1598_v38, %v1592_v0 }
 0xb8c   :  { %v1599_v51 = vmul.f32 %v1598_v38, %v1591_v50 }
 0xb8d   :  { %v1608_v52 = vadd.f32 %v1606_v49, %v1600_v39 }
 0xb8e   :  { %v1607_v54 = vadd.f32 %v1606_v49, %v1599_v51  ;;  %v2483_v30 = vpop.f32.mrb[26].mxu1 }
 0xb8f   :  { %vm1612_vm11 = vcmp.gt.f32.partialorder %v1608_v52, 0.0  ;;  %v1616_v62 = vmul.f32 0.01, %v1608_v52  ;;  %v1588_v55 = vadd.f32 %v2483_v30, %v1505_v9  ;;  %v1582_v56 = vpop.f32.mrb[27].mxu1 }
 0xb90   :  { %vm1611_vm12 = vcmp.gt.f32.partialorder %v1607_v54, 0.0  ;;  %v1615_v3 = vmul.f32 0.01, %v1607_v54  ;;  %v1583_v57 = vadd.f32 %v1582_v56, %v1505_v9 }
 0xb91   :  { %v1620_v12 = vsel %vm1612_vm11, %v1608_v52, %v1616_v62  ;;  %v1594_v60 = vmax.f32 %v1588_v55, 0.0  ;;  %vm1890_vm11 = vcmask 31744  }
 0xb92   :  { %v1624_v4 = vadd.f32 %v1620_v12, %v3654_v22  ;;  %v1619_v63 = vsel %vm1611_vm12, %v1607_v54, %v1615_v3  ;;  %v1593_v8 = vmax.f32 %v1583_v57, 0.0  ;;  %v2849_v22 = vpop.permute.xlu0 %2848 }
 0xb93   :  { %v1602_v29 = vmul.f32 %v1598_v38, %v1594_v60  ;;  %v1623_v18 = vadd.f32 %v1619_v63, %v3656_v24  ;;  %v2851_v1 = vunpack.i.h.bf16 %v2849_v22  ;;  %v2850_v16 = vunpack.i.l.bf16 %v2849_v22 }
 0xb94   :  { %v1664_v40 = vmul.f32 %v2846_v58, %v1624_v4  ;;  %v1601_v20 = vmul.f32 %v1598_v38, %v1593_v8  ;;  %v2045_v8 = vld [vmem:[#allocation2] ss:$0 sm:$0xff] }
 0xb95   :  { %v1610_v25 = vadd.f32 %v1606_v49, %v1602_v29  ;;  %v1663_v23 = vmul.f32 %v2845_v17, %v1623_v18 }
 0xb96   :  { %v1609_v26 = vadd.f32 %v1606_v49, %v1601_v20  ;;  %v1672_v11 = vmul.f32 %v1670_v13, %v1664_v40 }
 0xb97   :  { %vm1614_vm13 = vcmp.gt.f32.partialorder %v1610_v25, 0.0  ;;  %v1618_v59 = vmul.f32 0.01, %v1610_v25  ;;  %v1671_v2 = vmul.f32 %v1670_v13, %v1663_v23 }
 0xb98   :  { %vm1613_vm14 = vcmp.gt.f32.partialorder %v1609_v26, 0.0  ;;  %v1617_v21 = vmul.f32 0.01, %v1609_v26  ;;  %v1680_v24 = vadd.f32 %v1678_v32, %v1672_v11 }
 0xb99   :  { %v1622_v31 = vsel %vm1614_vm13, %v1610_v25, %v1618_v59  ;;  %v1679_v37 = vadd.f32 %v1678_v32, %v1671_v2 }
 0xb9a   :  { %v1621_v35 = vsel %vm1613_vm14, %v1609_v26, %v1617_v21  ;;  %v1626_v34 = vadd.f32 %v1622_v31, %v3665_v43 }
 0xb9b   :  { %2516 = vmatprep.mubr.f32.mxu0 %v1679_v37  ;;  %v1625_v36 = vadd.f32 %v1621_v35, %v3667_v46  ;;  %v2044_v46 = vld [vmem:[#allocation21] ss:$0 sm:$0xff]  ;;  %v1859_v35 = vld [vmem:[#allocation8 + $0x8] sm:$0xff] }
 0xb9c   :  { %2517 = vmatmul.mubr.f32.vlgmr.msra.gmra.mrb[28].mxu0 %v1680_v24  ;;  %v1666_v33 = vmul.f32 %v2851_v1, %v1626_v34  ;;  %v1858_v24 = vld [vmem:[#allocation8] sm:$0xff]  ;;  %vm1863_vm9 = vcmp.gt.f32.partialorder %v1859_v35, 0.0 }
 0xb9d   :  { %v1665_v5 = vmul.f32 %v2850_v16, %v1625_v36  ;;  %vm1862_vm10 = vcmp.gt.f32.partialorder %v1858_v24, 0.0  ;;  %v1861_v36 = vld [vmem:[#allocation8 + $0x18] sm:$0xff] }
 0xb9e   :  { %v1674_v42 = vmul.f32 %v1670_v13, %v1666_v33  ;;  %v1860_v33 = vld [vmem:[#allocation8 + $0x10] sm:$0xff]  ;;  %vm1865_vm12 = vcmp.gt.f32.partialorder %v1861_v36, 0.0 }
 0xb9f   :  { %v1673_v14 = vmul.f32 %v1670_v13, %v1665_v5  ;;  %vm1864_vm13 = vcmp.gt.f32.partialorder %v1860_v33, 0.0 }
 0xba0   :  { %v1682_v15 = vadd.f32 %v1678_v32, %v1674_v42 }
 0xba1   :  { %v1681_v6 = vadd.f32 %v1678_v32, %v1673_v14 }
 0xba3   :  { %2519 = vmatprep.mubr.f32.mxu0 %v1681_v6 }
 0xba4   :  { %2520 = vmatmul.mubr.f32.gmra.mrb[30].mxu0 %v1682_v15 }
 0xc6f   :  { %v2518_v44 = vpop.f32.mrb[28].mxu0 }
 0xc70   :  { %v1778_v45 = vadd.f32 %v2518_v44, %v2043_v10  ;;  %v1772_v9 = vpop.f32.mrb[29].mxu0 }
 0xc71   :  { %v1773_v47 = vadd.f32 %v2043_v10, %v1772_v9 }
 0xc72   :  { %vm1792_vm15 = vcmp.gt.f32.partialorder %v1778_v45, 0.0  ;;  %v1796_v43 = vmul.f32 0.01, %v1778_v45 }
 0xc73   :  { %vm1791_vm0 = vcmp.gt.f32.partialorder %v1773_v47, 0.0  ;;  %v1795_v41 = vmul.f32 0.01, %v1773_v47 }
 0xc74   :  { %v1800_v38 = vsel %vm1792_vm15, %v1778_v45, %v1796_v43 }
 0xc75   :  { %v1799_v7 = vsel %vm1791_vm0, %v1773_v47, %v1795_v41  ;;  %v1804_v48 = vmul.f32 %v2846_v58, %v1800_v38 }
 0xc76   :  { %v1803_v0 = vmul.f32 %v2845_v17, %v1799_v7 }
 0xc77   :  { %v2521_v49 = vpop.f32.mrb[30].mxu0  ;;  %v1815_v50 = vmul.f32 %v2044_v46, %v1804_v48 }
 0xc78   :  { %v1788_v39 = vadd.f32 %v2521_v49, %v2043_v10  ;;  %v1782_v51 = vpop.f32.mrb[31].mxu0  ;;  %v1814_v52 = vmul.f32 %v2044_v46, %v1803_v0 }
 0xc79   :  { %v1783_v53 = vadd.f32 %v2043_v10, %v1782_v51  ;;  %v1822_v54 = vsel %vm1818_vm1, %v1815_v50, 0.0 }
 0xc7a   :  { %vm1794_vm2 = vcmp.gt.f32.partialorder %v1788_v39, 0.0  ;;  %v1798_v30 = vmul.f32 0.01, %v1788_v39  ;;  %1823 = vadd.xlane.f32.xlu0 %v1822_v54  ;;  %v1819_v62 = vsel %vm1818_vm1, %v1814_v52, 0.0 }
 0xc7b   :  { %vm1793_vm3 = vcmp.gt.f32.partialorder %v1783_v53, 0.0  ;;  %v1797_v55 = vmul.f32 0.01, %v1783_v53  ;;  %1820 = vadd.xlane.f32.xlu1 %v1819_v62 }
 0xc7c   :  { %v1802_v56 = vsel %vm1794_vm2, %v1788_v39, %v1798_v30 }
 0xc7d   :  { %v1801_v3 = vsel %vm1793_vm3, %v1783_v53, %v1797_v55  ;;  %v1806_v57 = vmul.f32 %v2851_v1, %v1802_v56 }
 0xc7e   :  { %v1805_v58 = vmul.f32 %v2850_v16, %v1801_v3 }
 0xc7f   :  { %v1817_v12 = vmul.f32 %v2044_v46, %v1806_v57 }
 0xc80   :  { %v1816_v60 = vmul.f32 %v2044_v46, %v1805_v58 }
 0xc81   :  { %v1828_v4 = vsel %vm1818_vm1, %v1817_v12, 0.0 }
 0xc82   :  { %1829 = vadd.xlane.f32.xlu1 %v1828_v4  ;;  %v1825_v63 = vsel %vm1818_vm1, %v1816_v60, 0.0 }
 0xc83   :  { %1826 = vadd.xlane.f32.xlu0 %v1825_v63 }
 0xd07   :  { %v1824_v13 = vpop.xlane.xlu0 %1823 }
 0xd08   :  { %v1839_v17 = vadd.f32 %v2045_v8, %v1824_v13  ;;  %v1821_v29 = vpop.xlane.xlu1 %1820 }
 0xd09   :  { %v1838_v18 = vadd.f32 %v2045_v8, %v1821_v29 }
 0xd0a   :  { %vm1843_vm6 = vcmp.gt.f32.partialorder %v1839_v17, 0.0  ;;  %v1847_v40 = vmul.f32 0.01, %v1839_v17 }
 0xd0b   :  { %vm1842_vm7 = vcmp.gt.f32.partialorder %v1838_v18, 0.0  ;;  %v1846_v20 = vmul.f32 0.01, %v1838_v18 }
 0xd0c   :  { %v1851_v25 = vsel %vm1843_vm6, %v1839_v17, %v1847_v40 }
 0xd0d   :  { %v3725_v23 = vmul.f32 %v3682_v28, %v1851_v25  ;;  %v1850_v32 = vsel %vm1842_vm7, %v1838_v18, %v1846_v20 }
 0xd0e   :  { %v3728_v26 = vmul.f32 %v3679_v19, %v1850_v32 }
 0xd0f   :  { %1873 = vperm.xlu1 %2811, %v3725_v23   ;;  %v1830_v11 = vpop.xlane.xlu1 %1829 }
 0xd10   :  { %v1841_v22 = vadd.f32 %v2045_v8, %v1830_v11  ;;  %v1827_v59 = vpop.xlane.xlu0 %1826  ;;  %1868 = vperm.xlu0 %2810, %v3728_v26  }
 0xd11   :  { %v1840_v2 = vadd.f32 %v2045_v8, %v1827_v59 }
 0xd12   :  { %vm1845_vm4 = vcmp.gt.f32.partialorder %v1841_v22, 0.0  ;;  %v1849_v21 = vmul.f32 0.01, %v1841_v22 }
 0xd13   :  { %vm1844_vm8 = vcmp.gt.f32.partialorder %v1840_v2, 0.0  ;;  %v1848_v31 = vmul.f32 0.01, %v1840_v2 }
 0xd14   :  { %v1853_v37 = vsel %vm1845_vm4, %v1841_v22, %v1849_v21 }
 0xd15   :  { %v3733_v28 = vmul.f32 %v3694_v27, %v1853_v37  ;;  %v1852_v1 = vsel %vm1844_vm8, %v1840_v2, %v1848_v31 }
 0xd16   :  { %v3736_v19 = vmul.f32 %v3691_v61, %v1852_v1 }
 0xd17   :  { %1883 = vperm.xlu0 %2810, %v3733_v28  }
 0xd18   :  { %1878 = vperm.xlu1 %2811, %v3736_v19  }
 0xd8e   :  { %v1874_v34 = vpop.permute.xlu1 %1873 }
 0xd8f   :  { %v1869_v16 = vpop.permute.xlu0 %1868  ;;  %v1887_v27 = vsel %vm1863_vm9, %v1874_v34, -inf  ;;  %v1905_v5 = vsel %vm1863_vm9, %v1874_v34, inf }
 0xd90   :  { %v1886_v61 = vsel %vm1862_vm10, %v1869_v16, -inf  ;;  %v1904_v42 = vsel %vm1862_vm10, %v1869_v16, inf  ;;  %v1892_v14 = vsel %vm1890_vm11, %v1887_v27, -inf  ;;  %v1909_v6 = vsel %vm1890_vm11, %v1905_v5, inf }
 0xd91   :  { %v1891_v10 = vsel %vm1890_vm11, %v1886_v61, -inf  ;;  %v1908_v44 = vsel %vm1890_vm11, %v1904_v42, inf }
 0xd92   :  { %v1895_v0 = vmax.f32 %v1891_v10, %v1892_v14  ;;  %v1912_v49 = vmin.f32 %v1908_v44, %v1909_v6 }
 0xd96   :  { %v1884_v15 = vpop.permute.xlu0 %1883 }
 0xd97   :  { %v1889_v45 = vsel %vm1865_vm12, %v1884_v15, -inf  ;;  %v1907_v9 = vsel %vm1865_vm12, %v1884_v15, inf  ;;  %v1879_v47 = vpop.permute.xlu1 %1878 }
 0xd98   :  { %v1894_v43 = vsel %vm1890_vm11, %v1889_v45, -inf  ;;  %v1911_v41 = vsel %vm1890_vm11, %v1907_v9, inf  ;;  %v1888_v38 = vsel %vm1864_vm13, %v1879_v47, -inf  ;;  %v1906_v46 = vsel %vm1864_vm13, %v1879_v47, inf }
 0xd99   :  { %v1893_v7 = vsel %vm1890_vm11, %v1888_v38, -inf  ;;  %v1910_v48 = vsel %vm1890_vm11, %v1906_v46, inf }
 0xd9a   :  { %v1896_v50 = vmax.f32 %v1893_v7, %v1894_v43  ;;  %v1913_v39 = vmin.f32 %v1910_v48, %v1911_v41 }
 0xd9c   :  { %v1897_v51 = vmax.f32 %v1895_v0, %v1896_v50  ;;  %v1914_v52 = vmin.f32 %v1912_v49, %v1913_v39 }
 0xd9e   :  { %v1898_v53 = vrot.slane %v1897_v51, 4  ;;  %v1915_v54 = vrot.slane %v1914_v52, 4 }
 0xda0   :  { %v1899_v30 = vmax.f32 %v1897_v51, %v1898_v53  ;;  %v1916_v62 = vmin.f32 %v1914_v52, %v1915_v54 }
 0xda2   :  { %v1900_v55 = vrot.slane %v1899_v30, 2  ;;  %v1917_v56 = vrot.slane %v1916_v62, 2 }
 0xda4   :  { %v1901_v3 = vmax.f32 %v1899_v30, %v1900_v55  ;;  %v1918_v57 = vmin.f32 %v1916_v62, %v1917_v56 }
 0xda6   :  { %v1902_v58 = vrot.slane %v1901_v3, 1  ;;  %v1919_v60 = vrot.slane %v1918_v57, 1 }
 0xda8   :  { %v1903_v12 = vmax.f32 %v1901_v3, %v1902_v58  ;;  %v1920_v18 = vmin.f32 %v1918_v57, %v1919_v60 }
 0xdaa   :  { %v1922_v4 = vsel %vm1863_vm9, %v1903_v12, -inf  ;;  %v1921_v63 = vsel %vm1862_vm10, %v1903_v12, -inf  ;;  %v1923_v17 = vsel %vm1864_vm13, %v1903_v12, -inf  ;;  %v1924_v29 = vsel %vm1865_vm12, %v1903_v12, -inf }
 0xdab   :  { %v1928_v8 = vsel %vm1890_vm11, %v1922_v4, -inf  ;;  %v1925_v13 = vsel %vm1890_vm11, %v1921_v63, -inf  ;;  %v1931_v40 = vsel %vm1890_vm11, %v1923_v17, -inf  ;;  %v1934_v20 = vsel %vm1890_vm11, %v1924_v29, -inf }
 0xdac   :  { %1929 = vmax.xlane.f32.xlu0 %v1928_v8  ;;  %1926 = vmax.xlane.f32.xlu1 %v1925_v13  ;;  %v1937_v25 = vsel %vm1862_vm10, %v1920_v18, inf  ;;  %v1938_v32 = vsel %vm1863_vm9, %v1920_v18, inf  ;;  %v1939_v59 = vsel %vm1864_vm13, %v1920_v18, inf  ;;  %v1940_v2 = vsel %vm1865_vm12, %v1920_v18, inf }
 0xdad   :  { %v1941_v11 = vsel %vm1890_vm11, %v1937_v25, inf  ;;  %v1944_v22 = vsel %vm1890_vm11, %v1938_v32, inf  ;;  %v1947_v21 = vsel %vm1890_vm11, %v1939_v59, inf  ;;  %v1950_v31 = vsel %vm1890_vm11, %v1940_v2, inf }
 0xdb0   :  { %1932 = vmax.xlane.f32.xlu0 %v1931_v40  ;;  %1935 = vmax.xlane.f32.xlu1 %v1934_v20 }
 0xdb4   :  { %1942 = vmin.xlane.f32.xlu0 %v1941_v11  ;;  %1945 = vmin.xlane.f32.xlu1 %v1944_v22 }
 0xdb8   :  { %1948 = vmin.xlane.f32.xlu0 %v1947_v21  ;;  %1951 = vmin.xlane.f32.xlu1 %v1950_v31 }
 0xe39   :  { %v1930_v37 = vpop.xlane.xlu0 %1929  ;;  %v1927_v1 = vpop.xlane.xlu1 %1926 }
 0xe3a   :  { %v1958_v34 = vadd.f32 1e-06, %v1930_v37  ;;  %v1957_v16 = vadd.f32 1e-06, %v1927_v1 }
 0xe3d   :  { %v1933_v35 = vpop.xlane.xlu0 %1932  ;;  %v1936_v24 = vpop.xlane.xlu1 %1935 }
 0xe3e   :  { %v1959_v33 = vadd.f32 1e-06, %v1933_v35  ;;  %v1960_v14 = vadd.f32 1e-06, %v1936_v24 }
 0xe41   :  { %v1943_v27 = vpop.xlane.xlu0 %1942  ;;  %v1946_v5 = vpop.xlane.xlu1 %1945 }
 0xe42   :  { %v1961_v61 = vsub.f32 %v1957_v16, %v1943_v27  ;;  %v1962_v42 = vsub.f32 %v1958_v34, %v1946_v5  ;;  %v1953_v44 = vsub.f32 %v3728_v26, %v1943_v27  ;;  %v1954_v9 = vsub.f32 %v3725_v23, %v1946_v5 }
 0xe44   :  { %2854 = vrcp.f32 %v1961_v61 }
 0xe45   :  { %2856 = vrcp.f32 %v1962_v42  ;;  %v1949_v36 = vpop.xlane.xlu0 %1948  ;;  %v1952_v6 = vpop.xlane.xlu1 %1951 }
 0xe46   :  { %v1963_v15 = vsub.f32 %v1959_v33, %v1949_v36  ;;  %v1964_v10 = vsub.f32 %v1960_v14, %v1952_v6  ;;  %v1955_v38 = vsub.f32 %v3736_v19, %v1949_v36  ;;  %v1956_v7 = vsub.f32 %v3733_v28, %v1952_v6 }
 0xe48   :  { %2858 = vrcp.f32 %v1963_v15 }
 0xe49   :  { %2860 = vrcp.f32 %v1964_v10 }
 0xe4e   :  { %v2855_v45 = vpop.eup %2854 }
 0xe4f   :  { %v2857_v47 = vpop.eup %2856  ;;  %v1966_v43 = vmul.f32 %v2855_v45, %v1953_v44 }
 0xe50   :  { %v1968_v41 = vmul.f32 %v2857_v47, %v1954_v9 }
 0xe51   :  { %1973 = vst.msk [vmem:[#allocation23] sm:$0xff] %vm244_vm5, %v1966_v43 }
 0xe52   :  { %v2859_v46 = vpop.eup %2858  ;;  %1974 = vst.msk [vmem:[#allocation23 + $0x8] sm:$0xff] %vm244_vm5, %v1968_v41 }
 0xe53   :  { %v2861_v48 = vpop.eup %2860  ;;  %v1970_v0 = vmul.f32 %v2859_v46, %v1955_v38 }
 0xe54   :  { %v1972_v26 = vmul.f32 %v2861_v48, %v1956_v7 }
 0xe55   :  { %1975 = vst.msk [vmem:[#allocation23 + $0x10] sm:$0xff] %vm244_vm5, %v1970_v0 }
 0xe56   :  { %1976 = vst.msk [vmem:[#allocation23 + $0x18] sm:$0xff] %vm244_vm5, %v1972_v26 }
 0xe57   :  { %3139 = shalt.err (!%p3136_p2)
}
 0xe58   :  { %s3140_s15 = scalar_lea.hbm %s3808_s13, 512 }
 0xe59   :  { %p3141_p3 = scmp.ne.s32.totalorder %s3808_s13, %s3140_s15  ;;  %p3144_p4 = scmp.lt.u32.totalorder %s3140_s15, %s3808_s13 }
 0xe5b   :  { %p3146_p5 = pnand %p3144_p4, %p3141_p3 }
 0xe5d   :  { %3149 = shalt.err (!%p3146_p5)
}
 0xe5e   :  { %1988 = dma.vmem_to_hbm [thread:$0]  %s1983_s18, 512, %s3808_s13, [#allocation5], %s3173_s26, %s3173_s26, %s3174_s21  }
 0xe5f   :  { %3164 = dma.done.wait [#allocation5], 512  }
 0xe60   :  { %3165 = vsyncadd [#allocation5], 4294966784 }
 0xe61   :  { %1992 = vsyncpa [#allocation4], 1 }
 0xe62   :  { %1993 = vsyncpa [#allocation7], 1 }
 0xe63   :  { %1994 = vsyncpa [#allocation10], 1 }
 0xe64   :  { %1995 = vsyncpa [#allocation13], 1 }
 0xe65   :  { %1996 = vsyncpa [#allocation16], 1 }
 0xe66   :  { %1997 = vsyncpa [#allocation19], 1 }
 0xe67   :  { %1998 = vsyncpa [#allocation22], 1 }
 0xe68   :  { %1999 = vsyncpa [#allocation5], 1 }

</bundles_post_ra>
